<compile_context>
chip_gen: v7x
topology: tpu7x:2x2x1
jax: 0.10.0
libtpu: 0.0.40
codegen_flags: <defaults>
</compile_context>

<pallas_src>
import numpy as np
import jax
import jax.numpy as jnp
from jax.experimental import pallas as pl
from jax.experimental.pallas import tpu as pltpu

BN_EPS = 1e-5
LRELU_SLOPE = 0.2
LANES = 128


def _round_up(v, m):
    return ((v + m - 1) // m) * m


# ----------------------------------------------------------------------------
# Trace-time constant builders (numpy -> constants under jit)
# ----------------------------------------------------------------------------
def _conv_selection_matrix(n, h, w, k, stride, pad):
    """0/1 gather matrix S (k*k*M, n*h*w), M = n*oh*ow.

    For an activation matrix A whose rows are (n, y, x) row-major and whose
    columns are channels, (S @ A)[tap*M + m, :] is the input row feeding
    kernel tap (kh, kw) of output position m = (n, oy, ox).  Padded taps map
    to an all-zero selector row (== zero padding)."""
    oh = (h + 2 * pad - k) // stride + 1
    ow = (w + 2 * pad - k) // stride + 1
    m = n * oh * ow
    sel = np.zeros((k * k * m, n * h * w), np.float32)
    for kh in range(k):
        for kw in range(k):
            tap = kh * k + kw
            for b in range(n):
                for oy in range(oh):
                    iy = stride * oy + kh - pad
                    if iy < 0 or iy >= h:
                        continue
                    for ox in range(ow):
                        ix = stride * ox + kw - pad
                        if ix < 0 or ix >= w:
                            continue
                        sel[tap * m + (b * oh + oy) * ow + ox,
                            (b * h + iy) * w + ix] = 1.0
    return sel, oh, ow


def _cond_selection_matrix(n, h, w, k, n_pad):
    """Full-spatial (k == h == w, stride 1, no pad) conv gather matrix.

    Rows are grouped per kernel tap and padded to n_pad rows per tap so every
    in-kernel slice stays sublane (8-row) aligned."""
    sel = np.zeros((k * k * n_pad, n * h * w), np.float32)
    for kh in range(k):
        for kw in range(k):
            tap = kh * k + kw
            for b in range(n):
                sel[tap * n_pad + b, (b * h + kh) * w + kw] = 1.0
    return sel


def _im2col_k4s2p1(x):
    """(N, C, H, W) -> (N*OH*OW, C*16) patches for the first 4x4/s2/p1 conv.

    Column order is (ci, kh, kw), matching torch weight.reshape(Cout, -1)."""
    n, c, hh, ww = x.shape
    xp = jnp.pad(x, ((0, 0), (0, 0), (1, 1), (1, 1)))
    oh, ow = hh // 2, ww // 2
    cols = []
    for kh in range(4):
        for kw in range(4):
            cols.append(xp[:, :, kh:kh + 2 * oh - 1:2, kw:kw + 2 * ow - 1:2])
    p = jnp.stack(cols, axis=2)                    # (N, C, 16, OH, OW)
    p = p.reshape(n, c * 16, oh, ow)               # channel-major, tap-minor
    p = p.transpose(0, 2, 3, 1).reshape(n * oh * ow, c * 16)
    return p, oh, ow


# ----------------------------------------------------------------------------
# In-kernel helpers
# ----------------------------------------------------------------------------
def _bn_lrelu(y, gamma, beta):
    """BatchNorm2d (training mode, batch stats, one pass) + LeakyReLU(0.2).

    Kept in f32 (v5e VPU/EUP have no bf16); one rsqrt per channel on the EUP."""
    m = y.shape[0]
    inv_m = 1.0 / m
    s = jnp.sum(y, axis=0, keepdims=True)
    ss = jnp.sum(y * y, axis=0, keepdims=True)
    mean = s * inv_m
    var = jnp.maximum(ss * inv_m - mean * mean, 0.0)
    scale = gamma * jax.lax.rsqrt(var + BN_EPS)
    shift = beta - mean * scale
    z = y * scale + shift
    return jnp.where(z >= 0, z, LRELU_SLOPE * z)


def _gather_wide(sel_ref, h_bf16, rows, taps):
    """MXU-gather the conv taps, then lay them out lane-wide:
    (taps*rows, C) -> (rows, taps*C), bf16, ready for ONE wide contraction.

    sel is 0/1 and h is already bf16, so the f32->bf16 cast is exact."""
    pat = jnp.dot(sel_ref[...], h_bf16, preferred_element_type=jnp.float32)
    pieces = [pat[k * rows:(k + 1) * rows, :] for k in range(taps)]
    return jnp.concatenate(pieces, axis=-1).astype(jnp.bfloat16)


def _full_spec(shape):
    nd = len(shape)
    return pl.BlockSpec(shape, lambda i, _nd=nd: (0,) * _nd)


# ----------------------------------------------------------------------------
# Fused forward
# ----------------------------------------------------------------------------
@jax.jit
def patch_discriminator_forward(x, params):
    f32 = jnp.float32
    bf16 = jnp.bfloat16
    n = x.shape[0]
    main = params["main"]
    num_layers = len(main)

    # -------- JAX-side prep (fused under jit; selection matrices constant-fold)
    patches1, oh, ow = _im2col_k4s2p1(x)
    c0 = main[0]["w"].shape[0]
    # NOTE: the conv bias of the `main` layers is intentionally NOT passed to
    # the kernel: a per-channel constant added before BatchNorm with batch
    # statistics cancels exactly in (y - mean).
    inputs = [patches1.astype(bf16),
              main[0]["w"].reshape(c0, -1).T.astype(bf16),
              main[0]["gamma"].reshape(1, -1).astype(f32),
              main[0]["beta"].reshape(1, -1).astype(f32)]

    layer_meta = [(n * oh * ow, 16)]
    h_sp, c_prev = oh, c0
    for i in range(1, num_layers):
        w = main[i]["w"]
        c_out = w.shape[0]
        sel, oh2, ow2 = _conv_selection_matrix(n, h_sp, h_sp, 4, 2, 1)
        # weight as (taps*C_in, C_out): rows ordered tap-major, cin-minor,
        # matching the lane order produced by _gather_wide.
        wk = jnp.transpose(w, (2, 3, 1, 0)).reshape(16 * c_prev, c_out)
        inputs += [jnp.asarray(sel).astype(bf16),
                   wk.astype(bf16),
                   main[i]["gamma"].reshape(1, -1).astype(f32),
                   main[i]["beta"].reshape(1, -1).astype(f32)]
        layer_meta.append((n * oh2 * ow2, 16))
        h_sp, c_prev = oh2, c_out

    curr_dim = c_prev
    m_final = n * h_sp * h_sp

    # prob layer: 3x3 / s1 / p1, no bias.  Columns zero-padded -> lane-dense store.
    pc = _round_up(curr_dim, LANES)
    selp, _, _ = _conv_selection_matrix(n, h_sp, h_sp, 3, 1, 1)
    wp = jnp.transpose(params["prob_w"], (2, 3, 1, 0)).reshape(9 * curr_dim, curr_dim)
    wp = jnp.pad(wp, ((0, 0), (0, pc - curr_dim)))
    inputs += [jnp.asarray(selp).astype(bf16), wp.astype(bf16)]

    # cond layer: full-spatial k_size x k_size conv, no bias, + softmax.
    wc = params["cond_w"]
    c_dim, k_size = wc.shape[0], wc.shape[2]
    assert k_size == h_sp, "cond kernel must cover the full final feature map"
    cc = _round_up(c_dim, LANES)
    n_pad = max(8, ((n + 7) // 8) * 8)             # sublane-aligned batch pad
    selc = _cond_selection_matrix(n, h_sp, h_sp, k_size, n_pad)
    wcm = jnp.transpose(wc, (2, 3, 1, 0)).reshape(k_size * k_size * curr_dim, c_dim)
    wcm = jnp.pad(wcm, ((0, 0), (0, cc - c_dim)))
    # additive logit bias: 0 on real classes, -1e30 on padded lanes (-> exp == 0)
    cond_bias = jnp.where(jnp.arange(cc) < c_dim, 0.0, -1e30)[None, :].astype(f32)
    inputs += [jnp.asarray(selc).astype(bf16), wcm.astype(bf16), cond_bias]

    num_in = len(inputs)
    taps_cond = k_size * k_size

    # -------- the single fused kernel ----------------------------------------
    def fused_kernel(*refs):
        in_refs = refs[:num_in]
        out_real_ref, probs_ref = refs[num_in], refs[num_in + 1]
        idx = 0

        # main[0]: conv (pre-built im2col patches) + BN + LeakyReLU
        p1 = in_refs[idx][...]
        w1 = in_refs[idx + 1][...]
        g1 = in_refs[idx + 2][...]
        b1 = in_refs[idx + 3][...]
        idx += 4
        h = _bn_lrelu(jnp.dot(p1, w1, preferred_element_type=jnp.float32), g1, b1)

        # main[1:]: stride-2 convs.  MXU-gather the taps, then ONE wide
        # K = 16*C_in contraction per layer (no per-tap dot/add chain).
        for i in range(1, num_layers):
            rows, taps = layer_meta[i]
            sel_ref, wk_ref = in_refs[idx], in_refs[idx + 1]
            g, b = in_refs[idx + 2][...], in_refs[idx + 3][...]
            idx += 4
            pat_w = _gather_wide(sel_ref, h.astype(jnp.bfloat16), rows, taps)
            acc = jnp.dot(pat_w, wk_ref[...], preferred_element_type=jnp.float32)
            h = _bn_lrelu(acc, g, b)

        hb = h.astype(jnp.bfloat16)

        # prob layer (3x3, pad 1, no bias): K = 9*curr_dim wide dot,
        # lane-dense (m_final, pc) store.
        selp_ref, wp_ref = in_refs[idx], in_refs[idx + 1]
        idx += 2
        patp = _gather_wide(selp_ref, hb, m_final, 9)
        out_real_ref[...] = jnp.dot(patp, wp_ref[...],
                                    preferred_element_type=jnp.float32)

        # cond layer (full-spatial conv): K = k*k*curr_dim wide dot, then
        # exact softmax over the 128-lane padded class axis.
        selc_ref, wc_ref, cbias_ref = (in_refs[idx], in_refs[idx + 1],
                                       in_refs[idx + 2])
        patc = _gather_wide(selc_ref, hb, n_pad, taps_cond)
        logits = jnp.dot(patc, wc_ref[...],
                         preferred_element_type=jnp.float32) + cbias_ref[...]
        mx = jnp.max(logits, axis=1, keepdims=True)
        e = jnp.exp(logits - mx)
        probs_ref[...] = e / jnp.sum(e, axis=1, keepdims=True)   # exact divide

    out_real_mat, probs_pad = pl.pallas_call(
        fused_kernel,
        out_shape=(jax.ShapeDtypeStruct((m_final, pc), f32),
                   jax.ShapeDtypeStruct((n_pad, cc), f32)),
        grid=(1,),
        in_specs=[_full_spec(a.shape) for a in inputs],
        out_specs=(_full_spec((m_final, pc)), _full_spec((n_pad, cc))),
        compiler_params=pltpu.CompilerParams(
            dimension_semantics=("arbitrary",),
            vmem_limit_bytes=48 * 1024 * 1024),
    )(*inputs)

    # layout-only glue back to PyTorch's NCHW + squeeze semantics (jit-fused)
    out_real = out_real_mat[:, :curr_dim].reshape(n, h_sp, h_sp, curr_dim)
    out_real = jnp.squeeze(out_real.transpose(0, 3, 1, 2))
    probs = probs_pad[:n, :c_dim]   # keep (N, c_dim) even for N == 1
    return out_real, probs


# ----------------------------------------------------------------------------
# Parameters (mirrors the PyTorch module's parameter set)
# ----------------------------------------------------------------------------
def init_params(key, c_dim=5, image_size=16, conv_dim=8, repeat_num=2):
    params = {"main": []}
    cin, cout = 3, conv_dim
    for _ in range(repeat_num):
        key, k1, k2, k3, k4 = jax.random.split(key, 5)
        params["main"].append({
            "w": 0.05 * jax.random.normal(k1, (cout, cin, 4, 4), jnp.float32),
            # conv bias kept for module parity; it is a forward no-op under
            # batch-stat BatchNorm and is only consumed by the reference.
            "b": 0.05 * jax.random.normal(k2, (cout,), jnp.float32),
            "gamma": 1.0 + 0.1 * jax.random.normal(k3, (cout,), jnp.float32),
            "beta": 0.1 * jax.random.normal(k4, (cout,), jnp.float32),
        })
        cin, cout = cout, cout * 2
    curr_dim = cin
    k_size = image_size // (2 ** repeat_num)
    key, k5, k6 = jax.random.split(key, 3)
    params["prob_w"] = 0.05 * jax.random.normal(
        k5, (curr_dim, curr_dim, 3, 3), jnp.float32)
    params["cond_w"] = 0.05 * jax.random.normal(
        k6, (c_dim, curr_dim, k_size, k_size), jnp.float32)
    return params


# ----------------------------------------------------------------------------
# Pure-JAX reference (includes conv bias, which cancels under batch-stat BN)
# ----------------------------------------------------------------------------
def _reference_forward(x, params):
    def conv(h, w, stride, pad):
        return jax.lax.conv_general_dilated(
            h, w, (stride, stride), [(pad, pad), (pad, pad)],
            dimension_numbers=("NCHW", "OIHW", "NCHW"))

    h = x
    for layer in params["main"]:
        y = conv(h, layer["w"], 2, 1) + layer["b"][None, :, None, None]
        mean = jnp.mean(y, axis=(0, 2, 3), keepdims=True)
        var = jnp.mean((y - mean) ** 2, axis=(0, 2, 3), keepdims=True)
        y = (y - mean) * jax.lax.rsqrt(var + BN_EPS)
        y = y * layer["gamma"][None, :, None, None] + layer["beta"][None, :, None, None]
        h = jnp.where(y >= 0, y, LRELU_SLOPE * y)
    out_real = conv(h, params["prob_w"], 1, 1)
    out_aux = conv(h, params["cond_w"], 1, 0).reshape(x.shape[0], -1)
    return jnp.squeeze(out_real), jax.nn.softmax(out_aux, axis=1)


if __name__ == "__main__":
    key = jax.random.PRNGKey(0)
    kx, kp = jax.random.split(key)

    # Small config consistent with the module: c_dim=5, image_size=16,
    # conv_dim=8, repeat_num=2  =>  k_size = 16 / 2**2 = 4.
    params = init_params(kp, c_dim=5, image_size=16, conv_dim=8, repeat_num=2)
    x = jax.random.normal(kx, (2, 3, 16, 16), jnp.float32)

    out_real, probs = patch_discriminator_forward(x, params)
    jax.block_until_ready(out_real)
    jax.block_until_ready(probs)

    ref_real, ref_probs = _reference_forward(x, params)

    assert out_real.shape == (2, 16, 4, 4)
    assert probs.shape == (2, 5)
    assert bool(jnp.all(jnp.isfinite(out_real)))
    assert bool(jnp.allclose(jnp.sum(probs, axis=1), 1.0, atol=1e-3))
    # tolerances sized for bf16 matmul operands (f32 accumulation) vs the
    # all-f32 reference; still far tighter than any indexing/ordering bug.
    assert float(jnp.max(jnp.abs(out_real - ref_real))) < 1.5e-1
    assert float(jnp.max(jnp.abs(probs - ref_probs))) < 5e-2
    print("KERNEL_OK")
</pallas_src>

<mosaic_0001>
module attributes {stable_mosaic.version = 11 : i64} {
  func.func @fused_kernel(%arg0: i32, %arg1: memref<128x48xbf16, #tpu.memory_space<vmem>>, %arg2: memref<48x8xbf16, #tpu.memory_space<vmem>>, %arg3: memref<1x8xf32, #tpu.memory_space<vmem>>, %arg4: memref<1x8xf32, #tpu.memory_space<vmem>>, %arg5: memref<512x128xbf16, #tpu.memory_space<vmem>>, %arg6: memref<128x16xbf16, #tpu.memory_space<vmem>>, %arg7: memref<1x16xf32, #tpu.memory_space<vmem>>, %arg8: memref<1x16xf32, #tpu.memory_space<vmem>>, %arg9: memref<288x32xbf16, #tpu.memory_space<vmem>>, %arg10: memref<144x128xbf16, #tpu.memory_space<vmem>>, %arg11: memref<128x32xbf16, #tpu.memory_space<vmem>>, %arg12: memref<256x128xbf16, #tpu.memory_space<vmem>>, %arg13: memref<1x128xf32, #tpu.memory_space<vmem>>, %arg14: memref<32x128xf32, #tpu.memory_space<vmem>>, %arg15: memref<8x128xf32, #tpu.memory_space<vmem>>) attributes {dimension_semantics = [#tpu.dimension_semantics<arbitrary>], iteration_bounds = array<i64: 1>, scalar_prefetch = 0 : i64, scratch_operands = 0 : i64, tpu.core_type = #tpu.core_type<tc>, window_params = [{pipeline_mode = #tpu.pipeline_mode<synchronous>, transform_indices = @transform_0, window_bounds = array<i64: 128, 48>}, {pipeline_mode = #tpu.pipeline_mode<synchronous>, transform_indices = @transform_1, window_bounds = array<i64: 48, 8>}, {pipeline_mode = #tpu.pipeline_mode<synchronous>, transform_indices = @transform_2, window_bounds = array<i64: 1, 8>}, {pipeline_mode = #tpu.pipeline_mode<synchronous>, transform_indices = @transform_3, window_bounds = array<i64: 1, 8>}, {pipeline_mode = #tpu.pipeline_mode<synchronous>, transform_indices = @transform_4, window_bounds = array<i64: 512, 128>}, {pipeline_mode = #tpu.pipeline_mode<synchronous>, transform_indices = @transform_5, window_bounds = array<i64: 128, 16>}, {pipeline_mode = #tpu.pipeline_mode<synchronous>, transform_indices = @transform_6, window_bounds = array<i64: 1, 16>}, {pipeline_mode = #tpu.pipeline_mode<synchronous>, transform_indices = @transform_7, window_bounds = array<i64: 1, 16>}, {pipeline_mode = #tpu.pipeline_mode<synchronous>, transform_indices = @transform_8, window_bounds = array<i64: 288, 32>}, {pipeline_mode = #tpu.pipeline_mode<synchronous>, transform_indices = @transform_9, window_bounds = array<i64: 144, 128>}, {pipeline_mode = #tpu.pipeline_mode<synchronous>, transform_indices = @transform_10, window_bounds = array<i64: 128, 32>}, {pipeline_mode = #tpu.pipeline_mode<synchronous>, transform_indices = @transform_11, window_bounds = array<i64: 256, 128>}, {pipeline_mode = #tpu.pipeline_mode<synchronous>, transform_indices = @transform_12, window_bounds = array<i64: 1, 128>}, {pipeline_mode = #tpu.pipeline_mode<synchronous>, transform_indices = @transform_13, window_bounds = array<i64: 32, 128>}, {pipeline_mode = #tpu.pipeline_mode<synchronous>, transform_indices = @transform_14, window_bounds = array<i64: 8, 128>}]} {
    %c0 = arith.constant 0 : index
    %c0_0 = arith.constant 0 : index
    %0 = vector.load %arg1[%c0, %c0_0] : memref<128x48xbf16, #tpu.memory_space<vmem>>, vector<128x48xbf16>
    %c0_1 = arith.constant 0 : index
    %c0_2 = arith.constant 0 : index
    %1 = vector.load %arg2[%c0_1, %c0_2] : memref<48x8xbf16, #tpu.memory_space<vmem>>, vector<48x8xbf16>
    %c0_3 = arith.constant 0 : index
    %c0_4 = arith.constant 0 : index
    %2 = vector.load %arg3[%c0_3, %c0_4] : memref<1x8xf32, #tpu.memory_space<vmem>>, vector<1x8xf32>
    %c0_5 = arith.constant 0 : index
    %c0_6 = arith.constant 0 : index
    %3 = vector.load %arg4[%c0_5, %c0_6] : memref<1x8xf32, #tpu.memory_space<vmem>>, vector<1x8xf32>
    %cst = arith.constant dense<0.000000e+00> : vector<128x8xf32>
    %4 = tpu.matmul %0, %1, %cst {dimension_numbers = #tpu.dot_dimension_numbers<[1], [0], [0], [1], [0, 0, 1, 1], [], []>} : vector<128x48xbf16>, vector<48x8xbf16>, vector<128x8xf32> -> vector<128x8xf32>
    %cst_7 = arith.constant dense<0.000000e+00> : vector<8xf32>
    %5 = vector.multi_reduction <add>, %4, %cst_7 [0] : vector<128x8xf32> to vector<8xf32>
    %6 = vector.shape_cast %5 : vector<8xf32> to vector<1x8xf32>
    %7 = arith.mulf %4, %4 : vector<128x8xf32>
    %cst_8 = arith.constant dense<0.000000e+00> : vector<8xf32>
    %8 = vector.multi_reduction <add>, %7, %cst_8 [0] : vector<128x8xf32> to vector<8xf32>
    %9 = vector.shape_cast %8 : vector<8xf32> to vector<1x8xf32>
    %cst_9 = arith.constant 7.812500e-03 : f32
    %10 = vector.broadcast %cst_9 : f32 to vector<1x8xf32>
    %11 = arith.mulf %6, %10 : vector<1x8xf32>
    %cst_10 = arith.constant 7.812500e-03 : f32
    %12 = vector.broadcast %cst_10 : f32 to vector<1x8xf32>
    %13 = arith.mulf %9, %12 : vector<1x8xf32>
    %14 = arith.mulf %11, %11 : vector<1x8xf32>
    %15 = arith.subf %13, %14 : vector<1x8xf32>
    %cst_11 = arith.constant 0.000000e+00 : f32
    %16 = vector.broadcast %cst_11 : f32 to vector<1x8xf32>
    %17 = arith.maximumf %15, %16 : vector<1x8xf32>
    %cst_12 = arith.constant 9.99999974E-6 : f32
    %18 = vector.broadcast %cst_12 : f32 to vector<1x8xf32>
    %19 = arith.addf %17, %18 : vector<1x8xf32>
    %20 = math.rsqrt %19 : vector<1x8xf32>
    %21 = arith.mulf %2, %20 : vector<1x8xf32>
    %22 = arith.mulf %11, %21 : vector<1x8xf32>
    %23 = arith.subf %3, %22 : vector<1x8xf32>
    %24 = vector.broadcast %21 : vector<1x8xf32> to vector<128x8xf32>
    %25 = arith.mulf %4, %24 : vector<128x8xf32>
    %26 = vector.broadcast %23 : vector<1x8xf32> to vector<128x8xf32>
    %27 = arith.addf %25, %26 : vector<128x8xf32>
    %cst_13 = arith.constant 0.000000e+00 : f32
    %28 = vector.broadcast %cst_13 : f32 to vector<128x8xf32>
    %29 = arith.cmpf oge, %27, %28 : vector<128x8xf32>
    %cst_14 = arith.constant 2.000000e-01 : f32
    %30 = vector.broadcast %cst_14 : f32 to vector<128x8xf32>
    %31 = arith.mulf %30, %27 : vector<128x8xf32>
    %32 = arith.select %29, %27, %31 : vector<128x8xi1>, vector<128x8xf32>
    %c0_15 = arith.constant 0 : index
    %c0_16 = arith.constant 0 : index
    %33 = vector.load %arg7[%c0_15, %c0_16] : memref<1x16xf32, #tpu.memory_space<vmem>>, vector<1x16xf32>
    %c0_17 = arith.constant 0 : index
    %c0_18 = arith.constant 0 : index
    %34 = vector.load %arg8[%c0_17, %c0_18] : memref<1x16xf32, #tpu.memory_space<vmem>>, vector<1x16xf32>
    %35 = arith.truncf %32 : vector<128x8xf32> to vector<128x8xbf16>
    %c0_19 = arith.constant 0 : index
    %c0_20 = arith.constant 0 : index
    %36 = vector.load %arg5[%c0_19, %c0_20] : memref<512x128xbf16, #tpu.memory_space<vmem>>, vector<512x128xbf16>
    %cst_21 = arith.constant dense<0.000000e+00> : vector<512x8xf32>
    %37 = tpu.matmul %36, %35, %cst_21 {dimension_numbers = #tpu.dot_dimension_numbers<[1], [0], [0], [1], [0, 0, 1, 1], [], []>} : vector<512x128xbf16>, vector<128x8xbf16>, vector<512x8xf32> -> vector<512x8xf32>
    %38 = vector.extract_strided_slice %37 {offsets = [0, 0], sizes = [32, 8], strides = [1, 1]} : vector<512x8xf32> to vector<32x8xf32>
    %39 = vector.extract_strided_slice %37 {offsets = [32, 0], sizes = [32, 8], strides = [1, 1]} : vector<512x8xf32> to vector<32x8xf32>
    %40 = vector.extract_strided_slice %37 {offsets = [64, 0], sizes = [32, 8], strides = [1, 1]} : vector<512x8xf32> to vector<32x8xf32>
    %41 = vector.extract_strided_slice %37 {offsets = [96, 0], sizes = [32, 8], strides = [1, 1]} : vector<512x8xf32> to vector<32x8xf32>
    %42 = vector.extract_strided_slice %37 {offsets = [128, 0], sizes = [32, 8], strides = [1, 1]} : vector<512x8xf32> to vector<32x8xf32>
    %43 = vector.extract_strided_slice %37 {offsets = [160, 0], sizes = [32, 8], strides = [1, 1]} : vector<512x8xf32> to vector<32x8xf32>
    %44 = vector.extract_strided_slice %37 {offsets = [192, 0], sizes = [32, 8], strides = [1, 1]} : vector<512x8xf32> to vector<32x8xf32>
    %45 = vector.extract_strided_slice %37 {offsets = [224, 0], sizes = [32, 8], strides = [1, 1]} : vector<512x8xf32> to vector<32x8xf32>
    %46 = vector.extract_strided_slice %37 {offsets = [256, 0], sizes = [32, 8], strides = [1, 1]} : vector<512x8xf32> to vector<32x8xf32>
    %47 = vector.extract_strided_slice %37 {offsets = [288, 0], sizes = [32, 8], strides = [1, 1]} : vector<512x8xf32> to vector<32x8xf32>
    %48 = vector.extract_strided_slice %37 {offsets = [320, 0], sizes = [32, 8], strides = [1, 1]} : vector<512x8xf32> to vector<32x8xf32>
    %49 = vector.extract_strided_slice %37 {offsets = [352, 0], sizes = [32, 8], strides = [1, 1]} : vector<512x8xf32> to vector<32x8xf32>
    %50 = vector.extract_strided_slice %37 {offsets = [384, 0], sizes = [32, 8], strides = [1, 1]} : vector<512x8xf32> to vector<32x8xf32>
    %51 = vector.extract_strided_slice %37 {offsets = [416, 0], sizes = [32, 8], strides = [1, 1]} : vector<512x8xf32> to vector<32x8xf32>
    %52 = vector.extract_strided_slice %37 {offsets = [448, 0], sizes = [32, 8], strides = [1, 1]} : vector<512x8xf32> to vector<32x8xf32>
    %53 = vector.extract_strided_slice %37 {offsets = [480, 0], sizes = [32, 8], strides = [1, 1]} : vector<512x8xf32> to vector<32x8xf32>
    %54 = tpu.concatenate %38, %39, %40, %41, %42, %43, %44, %45, %46, %47, %48, %49, %50, %51, %52, %53 in 1 : vector<32x8xf32>, vector<32x8xf32>, vector<32x8xf32>, vector<32x8xf32>, vector<32x8xf32>, vector<32x8xf32>, vector<32x8xf32>, vector<32x8xf32>, vector<32x8xf32>, vector<32x8xf32>, vector<32x8xf32>, vector<32x8xf32>, vector<32x8xf32>, vector<32x8xf32>, vector<32x8xf32>, vector<32x8xf32> -> vector<32x128xf32>
    %55 = arith.truncf %54 : vector<32x128xf32> to vector<32x128xbf16>
    %c0_22 = arith.constant 0 : index
    %c0_23 = arith.constant 0 : index
    %56 = vector.load %arg6[%c0_22, %c0_23] : memref<128x16xbf16, #tpu.memory_space<vmem>>, vector<128x16xbf16>
    %cst_24 = arith.constant dense<0.000000e+00> : vector<32x16xf32>
    %57 = tpu.matmul %55, %56, %cst_24 {dimension_numbers = #tpu.dot_dimension_numbers<[1], [0], [0], [1], [0, 0, 1, 1], [], []>} : vector<32x128xbf16>, vector<128x16xbf16>, vector<32x16xf32> -> vector<32x16xf32>
    %cst_25 = arith.constant dense<0.000000e+00> : vector<16xf32>
    %58 = vector.multi_reduction <add>, %57, %cst_25 [0] : vector<32x16xf32> to vector<16xf32>
    %59 = vector.shape_cast %58 : vector<16xf32> to vector<1x16xf32>
    %60 = arith.mulf %57, %57 : vector<32x16xf32>
    %cst_26 = arith.constant dense<0.000000e+00> : vector<16xf32>
    %61 = vector.multi_reduction <add>, %60, %cst_26 [0] : vector<32x16xf32> to vector<16xf32>
    %62 = vector.shape_cast %61 : vector<16xf32> to vector<1x16xf32>
    %cst_27 = arith.constant 3.125000e-02 : f32
    %63 = vector.broadcast %cst_27 : f32 to vector<1x16xf32>
    %64 = arith.mulf %59, %63 : vector<1x16xf32>
    %cst_28 = arith.constant 3.125000e-02 : f32
    %65 = vector.broadcast %cst_28 : f32 to vector<1x16xf32>
    %66 = arith.mulf %62, %65 : vector<1x16xf32>
    %67 = arith.mulf %64, %64 : vector<1x16xf32>
    %68 = arith.subf %66, %67 : vector<1x16xf32>
    %cst_29 = arith.constant 0.000000e+00 : f32
    %69 = vector.broadcast %cst_29 : f32 to vector<1x16xf32>
    %70 = arith.maximumf %68, %69 : vector<1x16xf32>
    %cst_30 = arith.constant 9.99999974E-6 : f32
    %71 = vector.broadcast %cst_30 : f32 to vector<1x16xf32>
    %72 = arith.addf %70, %71 : vector<1x16xf32>
    %73 = math.rsqrt %72 : vector<1x16xf32>
    %74 = arith.mulf %33, %73 : vector<1x16xf32>
    %75 = arith.mulf %64, %74 : vector<1x16xf32>
    %76 = arith.subf %34, %75 : vector<1x16xf32>
    %77 = vector.broadcast %74 : vector<1x16xf32> to vector<32x16xf32>
    %78 = arith.mulf %57, %77 : vector<32x16xf32>
    %79 = vector.broadcast %76 : vector<1x16xf32> to vector<32x16xf32>
    %80 = arith.addf %78, %79 : vector<32x16xf32>
    %cst_31 = arith.constant 0.000000e+00 : f32
    %81 = vector.broadcast %cst_31 : f32 to vector<32x16xf32>
    %82 = arith.cmpf oge, %80, %81 : vector<32x16xf32>
    %cst_32 = arith.constant 2.000000e-01 : f32
    %83 = vector.broadcast %cst_32 : f32 to vector<32x16xf32>
    %84 = arith.mulf %83, %80 : vector<32x16xf32>
    %85 = arith.select %82, %80, %84 : vector<32x16xi1>, vector<32x16xf32>
    %86 = arith.truncf %85 : vector<32x16xf32> to vector<32x16xbf16>
    %c0_33 = arith.constant 0 : index
    %c0_34 = arith.constant 0 : index
    %87 = vector.load %arg9[%c0_33, %c0_34] : memref<288x32xbf16, #tpu.memory_space<vmem>>, vector<288x32xbf16>
    %cst_35 = arith.constant dense<0.000000e+00> : vector<288x16xf32>
    %88 = tpu.matmul %87, %86, %cst_35 {dimension_numbers = #tpu.dot_dimension_numbers<[1], [0], [0], [1], [0, 0, 1, 1], [], []>} : vector<288x32xbf16>, vector<32x16xbf16>, vector<288x16xf32> -> vector<288x16xf32>
    %89 = vector.extract_strided_slice %88 {offsets = [0, 0], sizes = [32, 16], strides = [1, 1]} : vector<288x16xf32> to vector<32x16xf32>
    %90 = vector.extract_strided_slice %88 {offsets = [32, 0], sizes = [32, 16], strides = [1, 1]} : vector<288x16xf32> to vector<32x16xf32>
    %91 = vector.extract_strided_slice %88 {offsets = [64, 0], sizes = [32, 16], strides = [1, 1]} : vector<288x16xf32> to vector<32x16xf32>
    %92 = vector.extract_strided_slice %88 {offsets = [96, 0], sizes = [32, 16], strides = [1, 1]} : vector<288x16xf32> to vector<32x16xf32>
    %93 = vector.extract_strided_slice %88 {offsets = [128, 0], sizes = [32, 16], strides = [1, 1]} : vector<288x16xf32> to vector<32x16xf32>
    %94 = vector.extract_strided_slice %88 {offsets = [160, 0], sizes = [32, 16], strides = [1, 1]} : vector<288x16xf32> to vector<32x16xf32>
    %95 = vector.extract_strided_slice %88 {offsets = [192, 0], sizes = [32, 16], strides = [1, 1]} : vector<288x16xf32> to vector<32x16xf32>
    %96 = vector.extract_strided_slice %88 {offsets = [224, 0], sizes = [32, 16], strides = [1, 1]} : vector<288x16xf32> to vector<32x16xf32>
    %97 = vector.extract_strided_slice %88 {offsets = [256, 0], sizes = [32, 16], strides = [1, 1]} : vector<288x16xf32> to vector<32x16xf32>
    %98 = tpu.concatenate %89, %90, %91, %92, %93, %94, %95, %96, %97 in 1 : vector<32x16xf32>, vector<32x16xf32>, vector<32x16xf32>, vector<32x16xf32>, vector<32x16xf32>, vector<32x16xf32>, vector<32x16xf32>, vector<32x16xf32>, vector<32x16xf32> -> vector<32x144xf32>
    %99 = arith.truncf %98 : vector<32x144xf32> to vector<32x144xbf16>
    %c0_36 = arith.constant 0 : index
    %c0_37 = arith.constant 0 : index
    %100 = vector.load %arg10[%c0_36, %c0_37] : memref<144x128xbf16, #tpu.memory_space<vmem>>, vector<144x128xbf16>
    %cst_38 = arith.constant dense<0.000000e+00> : vector<32x128xf32>
    %101 = tpu.matmul %99, %100, %cst_38 {dimension_numbers = #tpu.dot_dimension_numbers<[1], [0], [0], [1], [0, 0, 1, 1], [], []>} : vector<32x144xbf16>, vector<144x128xbf16>, vector<32x128xf32> -> vector<32x128xf32>
    %c0_39 = arith.constant 0 : index
    %c0_40 = arith.constant 0 : index
    %102 = vector.load %arg14[%c0_39, %c0_40] : memref<32x128xf32, #tpu.memory_space<vmem>>, vector<32x128xf32>
    tpu.vector_store %arg14[%c0_39, %c0_40], %101 {strides = array<i32>} : memref<32x128xf32, #tpu.memory_space<vmem>>, vector<32x128xf32>,
    %c0_41 = arith.constant 0 : index
    %c0_42 = arith.constant 0 : index
    %103 = vector.load %arg11[%c0_41, %c0_42] : memref<128x32xbf16, #tpu.memory_space<vmem>>, vector<128x32xbf16>
    %cst_43 = arith.constant dense<0.000000e+00> : vector<128x16xf32>
    %104 = tpu.matmul %103, %86, %cst_43 {dimension_numbers = #tpu.dot_dimension_numbers<[1], [0], [0], [1], [0, 0, 1, 1], [], []>} : vector<128x32xbf16>, vector<32x16xbf16>, vector<128x16xf32> -> vector<128x16xf32>
    %105 = vector.extract_strided_slice %104 {offsets = [0, 0], sizes = [8, 16], strides = [1, 1]} : vector<128x16xf32> to vector<8x16xf32>
    %106 = vector.extract_strided_slice %104 {offsets = [8, 0], sizes = [8, 16], strides = [1, 1]} : vector<128x16xf32> to vector<8x16xf32>
    %107 = vector.extract_strided_slice %104 {offsets = [16, 0], sizes = [8, 16], strides = [1, 1]} : vector<128x16xf32> to vector<8x16xf32>
    %108 = vector.extract_strided_slice %104 {offsets = [24, 0], sizes = [8, 16], strides = [1, 1]} : vector<128x16xf32> to vector<8x16xf32>
    %109 = vector.extract_strided_slice %104 {offsets = [32, 0], sizes = [8, 16], strides = [1, 1]} : vector<128x16xf32> to vector<8x16xf32>
    %110 = vector.extract_strided_slice %104 {offsets = [40, 0], sizes = [8, 16], strides = [1, 1]} : vector<128x16xf32> to vector<8x16xf32>
    %111 = vector.extract_strided_slice %104 {offsets = [48, 0], sizes = [8, 16], strides = [1, 1]} : vector<128x16xf32> to vector<8x16xf32>
    %112 = vector.extract_strided_slice %104 {offsets = [56, 0], sizes = [8, 16], strides = [1, 1]} : vector<128x16xf32> to vector<8x16xf32>
    %113 = vector.extract_strided_slice %104 {offsets = [64, 0], sizes = [8, 16], strides = [1, 1]} : vector<128x16xf32> to vector<8x16xf32>
    %114 = vector.extract_strided_slice %104 {offsets = [72, 0], sizes = [8, 16], strides = [1, 1]} : vector<128x16xf32> to vector<8x16xf32>
    %115 = vector.extract_strided_slice %104 {offsets = [80, 0], sizes = [8, 16], strides = [1, 1]} : vector<128x16xf32> to vector<8x16xf32>
    %116 = vector.extract_strided_slice %104 {offsets = [88, 0], sizes = [8, 16], strides = [1, 1]} : vector<128x16xf32> to vector<8x16xf32>
    %117 = vector.extract_strided_slice %104 {offsets = [96, 0], sizes = [8, 16], strides = [1, 1]} : vector<128x16xf32> to vector<8x16xf32>
    %118 = vector.extract_strided_slice %104 {offsets = [104, 0], sizes = [8, 16], strides = [1, 1]} : vector<128x16xf32> to vector<8x16xf32>
    %119 = vector.extract_strided_slice %104 {offsets = [112, 0], sizes = [8, 16], strides = [1, 1]} : vector<128x16xf32> to vector<8x16xf32>
    %120 = vector.extract_strided_slice %104 {offsets = [120, 0], sizes = [8, 16], strides = [1, 1]} : vector<128x16xf32> to vector<8x16xf32>
    %121 = tpu.concatenate %105, %106, %107, %108, %109, %110, %111, %112, %113, %114, %115, %116, %117, %118, %119, %120 in 1 : vector<8x16xf32>, vector<8x16xf32>, vector<8x16xf32>, vector<8x16xf32>, vector<8x16xf32>, vector<8x16xf32>, vector<8x16xf32>, vector<8x16xf32>, vector<8x16xf32>, vector<8x16xf32>, vector<8x16xf32>, vector<8x16xf32>, vector<8x16xf32>, vector<8x16xf32>, vector<8x16xf32>, vector<8x16xf32> -> vector<8x256xf32>
    %122 = arith.truncf %121 : vector<8x256xf32> to vector<8x256xbf16>
    %c0_44 = arith.constant 0 : index
    %c0_45 = arith.constant 0 : index
    %123 = vector.load %arg12[%c0_44, %c0_45] : memref<256x128xbf16, #tpu.memory_space<vmem>>, vector<256x128xbf16>
    %cst_46 = arith.constant dense<0.000000e+00> : vector<8x128xf32>
    %124 = tpu.matmul %122, %123, %cst_46 {dimension_numbers = #tpu.dot_dimension_numbers<[1], [0], [0], [1], [0, 0, 1, 1], [], []>} : vector<8x256xbf16>, vector<256x128xbf16>, vector<8x128xf32> -> vector<8x128xf32>
    %c0_47 = arith.constant 0 : index
    %c0_48 = arith.constant 0 : index
    %125 = vector.load %arg13[%c0_47, %c0_48] : memref<1x128xf32, #tpu.memory_space<vmem>>, vector<1x128xf32>
    %126 = vector.broadcast %125 : vector<1x128xf32> to vector<8x128xf32>
    %127 = arith.addf %124, %126 : vector<8x128xf32>
    %cst_49 = arith.constant dense<0xFF800000> : vector<8xf32>
    %128 = vector.multi_reduction <maximumf>, %127, %cst_49 [1] : vector<8x128xf32> to vector<8xf32>
    %129 = vector.shape_cast %128 : vector<8xf32> to vector<8x1xf32>
    %130 = vector.broadcast %129 : vector<8x1xf32> to vector<8x128xf32>
    %131 = arith.subf %127, %130 : vector<8x128xf32>
    %132 = math.exp %131 : vector<8x128xf32>
    %cst_50 = arith.constant dense<0.000000e+00> : vector<8xf32>
    %133 = vector.multi_reduction <add>, %132, %cst_50 [1] : vector<8x128xf32> to vector<8xf32>
    %134 = vector.shape_cast %133 : vector<8xf32> to vector<8x1xf32>
    %135 = vector.broadcast %134 : vector<8x1xf32> to vector<8x128xf32>
    %136 = arith.divf %132, %135 : vector<8x128xf32>
    %c0_51 = arith.constant 0 : index
    %c0_52 = arith.constant 0 : index
    %137 = vector.load %arg15[%c0_51, %c0_52] : memref<8x128xf32, #tpu.memory_space<vmem>>, vector<8x128xf32>
    tpu.vector_store %arg15[%c0_51, %c0_52], %136 {strides = array<i32>} : memref<8x128xf32, #tpu.memory_space<vmem>>, vector<8x128xf32>,
    return
  }
  func.func @transform_0(%arg0: i32) -> (i32, i32) {
    %c0_i32 = arith.constant 0 : i32
    %c0_i32_0 = arith.constant 0 : i32
    %c0_i32_1 = arith.constant 0 : i32
    return %c0_i32, %c0_i32_0 : i32, i32
  }
  func.func @transform_1(%arg0: i32) -> (i32, i32) {
    %c0_i32 = arith.constant 0 : i32
    %c0_i32_0 = arith.constant 0 : i32
    %c0_i32_1 = arith.constant 0 : i32
    return %c0_i32, %c0_i32_0 : i32, i32
  }
  func.func @transform_2(%arg0: i32) -> (i32, i32) {
    %c0_i32 = arith.constant 0 : i32
    %c0_i32_0 = arith.constant 0 : i32
    %c0_i32_1 = arith.constant 0 : i32
    return %c0_i32, %c0_i32_0 : i32, i32
  }
  func.func @transform_3(%arg0: i32) -> (i32, i32) {
    %c0_i32 = arith.constant 0 : i32
    %c0_i32_0 = arith.constant 0 : i32
    %c0_i32_1 = arith.constant 0 : i32
    return %c0_i32, %c0_i32_0 : i32, i32
  }
  func.func @transform_4(%arg0: i32) -> (i32, i32) {
    %c0_i32 = arith.constant 0 : i32
    %c0_i32_0 = arith.constant 0 : i32
    %c0_i32_1 = arith.constant 0 : i32
    return %c0_i32, %c0_i32_0 : i32, i32
  }
  func.func @transform_5(%arg0: i32) -> (i32, i32) {
    %c0_i32 = arith.constant 0 : i32
    %c0_i32_0 = arith.constant 0 : i32
    %c0_i32_1 = arith.constant 0 : i32
    return %c0_i32, %c0_i32_0 : i32, i32
  }
  func.func @transform_6(%arg0: i32) -> (i32, i32) {
    %c0_i32 = arith.constant 0 : i32
    %c0_i32_0 = arith.constant 0 : i32
    %c0_i32_1 = arith.constant 0 : i32
    return %c0_i32, %c0_i32_0 : i32, i32
  }
  func.func @transform_7(%arg0: i32) -> (i32, i32) {
    %c0_i32 = arith.constant 0 : i32
    %c0_i32_0 = arith.constant 0 : i32
    %c0_i32_1 = arith.constant 0 : i32
    return %c0_i32, %c0_i32_0 : i32, i32
  }
  func.func @transform_8(%arg0: i32) -> (i32, i32) {
    %c0_i32 = arith.constant 0 : i32
    %c0_i32_0 = arith.constant 0 : i32
    %c0_i32_1 = arith.constant 0 : i32
    return %c0_i32, %c0_i32_0 : i32, i32
  }
  func.func @transform_9(%arg0: i32) -> (i32, i32) {
    %c0_i32 = arith.constant 0 : i32
    %c0_i32_0 = arith.constant 0 : i32
    %c0_i32_1 = arith.constant 0 : i32
    return %c0_i32, %c0_i32_0 : i32, i32
  }
  func.func @transform_10(%arg0: i32) -> (i32, i32) {
    %c0_i32 = arith.constant 0 : i32
    %c0_i32_0 = arith.constant 0 : i32
    %c0_i32_1 = arith.constant 0 : i32
    return %c0_i32, %c0_i32_0 : i32, i32
  }
  func.func @transform_11(%arg0: i32) -> (i32, i32) {
    %c0_i32 = arith.constant 0 : i32
    %c0_i32_0 = arith.constant 0 : i32
    %c0_i32_1 = arith.constant 0 : i32
    return %c0_i32, %c0_i32_0 : i32, i32
  }
  func.func @transform_12(%arg0: i32) -> (i32, i32) {
    %c0_i32 = arith.constant 0 : i32
    %c0_i32_0 = arith.constant 0 : i32
    %c0_i32_1 = arith.constant 0 : i32
    return %c0_i32, %c0_i32_0 : i32, i32
  }
  func.func @transform_13(%arg0: i32) -> (i32, i32) {
    %c0_i32 = arith.constant 0 : i32
    %c0_i32_0 = arith.constant 0 : i32
    %c0_i32_1 = arith.constant 0 : i32
    return %c0_i32, %c0_i32_0 : i32, i32
  }
  func.func @transform_14(%arg0: i32) -> (i32, i32) {
    %c0_i32 = arith.constant 0 : i32
    %c0_i32_0 = arith.constant 0 : i32
    %c0_i32_1 = arith.constant 0 : i32
    return %c0_i32, %c0_i32_0 : i32, i32
  }
}

</mosaic_0001>

<bundles_post_ra>
// kernel: patch_discriminator_forward.1
= control target key start
LH: loop header
LB: loop body
LE: loop exit
PB: predicated region body
PF: predicated region fallthrough
CT: control target
= control target key end

     0   :  { %vm130_vm0 = vcmask 392192   ;;  %s4316_s0 = inlined_call_operand.vmem [shape: bf16[128,48], index: 0, kind: input, shape index: {}]   ;;  %s4317_s1 = inlined_call_operand.vmem [shape: bf16[48,8], index: 1, kind: input, shape index: {}]   ;;  %s4318_s2 = inlined_call_operand.vmem [shape: f32[1,8], index: 2, kind: input, shape index: {}]   ;;  %s4319_s3 = inlined_call_operand.vmem [shape: f32[1,8], index: 3, kind: input, shape index: {}]   ;;  %s4320_s4 = inlined_call_operand.vmem [shape: bf16[512,128], index: 4, kind: input, shape index: {}]   ;;  %s4321_s5 = inlined_call_operand.vmem [shape: bf16[128,16], index: 5, kind: input, shape index: {}]   ;;  %s4322_s6 = inlined_call_operand.vmem [shape: f32[1,16], index: 6, kind: input, shape index: {}]   ;;  %s4323_s7 = inlined_call_operand.vmem [shape: f32[1,16], index: 7, kind: input, shape index: {}]   ;;  %s4324_s8 = inlined_call_operand.vmem [shape: bf16[288,32], index: 8, kind: input, shape index: {}]   ;;  %s4325_s9 = inlined_call_operand.vmem [shape: bf16[144,128], index: 9, kind: input, shape index: {}]   ;;  %s4326_s10 = inlined_call_operand.vmem [shape: bf16[128,32], index: 10, kind: input, shape index: {}]   ;;  %s4327_s11 = inlined_call_operand.vmem [shape: bf16[256,128], index: 11, kind: input, shape index: {}]   ;;  %s4328_s12 = inlined_call_operand.vmem [shape: f32[1,128], index: 12, kind: input, shape index: {}]   ;;  %s4329_s13 = inlined_call_operand.hbm [shape: f32[32,128], index: 13, kind: output, shape index: {0}]   ;;  %s4330_s14 = inlined_call_operand.vmem [shape: f32[8,128], index: 14, kind: output, shape index: {1}]  }
   0x1   :  { %v3295_v0 = vld [vmem:[%s4317_s1] sm:$0xff]   ;;  %v3296_v1 = vld [vmem:[%s4317_s1 + $0x8] sm:$0xff]   ;;  %v3297_v3 = vld [vmem:[%s4317_s1 + $0x10] sm:$0xff]  }
   0x2   :  { %2840 = vmatprep.subr.bf16.mxu0 %v3295_v0  ;;  %v3298_v2 = vld [vmem:[%s4316_s0] sm:$0xff]   ;;  %v3299_v4 = vld [vmem:[%s4316_s0 + $0x8] sm:$0xff]   ;;  %v3300_v5 = vld [vmem:[%s4316_s0 + $0x10] sm:$0xff]  }
   0x3   :  { %2841 = vmatpush3.bf16.msra.mxu0 %v3295_v0  ;;  %2846 = vmatprep.mubr.msk.bf16.mxu0 %vm130_vm0, %v3298_v2  ;;  %v3301_v6 = vld [vmem:[%s4316_s0 + $0x18] sm:$0xff]   ;;  %v3302_v7 = vld [vmem:[%s4316_s0 + $0x20] sm:$0xff]   ;;  %v3303_v8 = vld [vmem:[%s4316_s0 + $0x28] sm:$0xff]  }
   0x4   :  { %2842 = vmatprep.subr.bf16.mxu0 %v3296_v1  ;;  %v3304_v9 = vld [vmem:[%s4316_s0 + $0x30] sm:$0xff]   ;;  %v3305_v10 = vld [vmem:[%s4316_s0 + $0x38] sm:$0xff]  }
   0x7   :  { %2843 = vmatpush3.bf16.msra.mxu0 %v3296_v1 }
   0x8   :  { %2844 = vmatprep.subr.bf16.mxu0 %v3297_v3 }
   0xb   :  { %2845 = vmatpush3.bf16.msra.mxu0 %v3297_v3 }
   0xe   :  { %2847 = vmatmul.mubr.msk.bf16.vlgmr.msra.gmra.mrb[0].mxu0 %vm130_vm0, %v3299_v4 }
   0xf   :  { %2850 = vmatprep.mubr.msk.bf16.mxu0 %vm130_vm0, %v3300_v5 }
  0x16   :  { %2851 = vmatmul.mubr.msk.bf16.gmra.mrb[4].mxu0 %vm130_vm0, %v3301_v6 }
  0x17   :  { %2854 = vmatprep.mubr.msk.bf16.mxu0 %vm130_vm0, %v3302_v7 }
  0x1e   :  { %2855 = vmatmul.mubr.msk.bf16.gmra.mrb[8].mxu0 %vm130_vm0, %v3303_v8 }
  0x1f   :  { %2858 = vmatprep.mubr.msk.bf16.mxu0 %vm130_vm0, %v3304_v9 }
  0x26   :  { %2859 = vmatmul.mubr.msk.bf16.gmra.mrb[12].mxu0 %vm130_vm0, %v3305_v10 }
  0x27   :  { %20 = vsyncpa [#allocation3], 0  ;;  %v3306_v11 = vld [vmem:[%s4320_s4] sm:$0xff]   ;;  %vm252_vm1 = vcmask 64512   ;;  %s3429_s23 = smov 8   ;;  %s3431_s24 = smov 24  }
  0x28   :  { %2878 = vmatprep.mubr.bf16.mxu1 %v3306_v11  ;;  %s3432_s25 = smov 32   ;;  %s3433_s26 = smov 40  }
  0x29   :  { %s3434_s1 = smov 48   ;;  %s3435_s27 = smov 56  }
  0x2a   :  { %s3436_s28 = smov 64   ;;  %s3437_s29 = smov 72  }
  0x2b   :  { %s3438_s16 = smov 80   ;;  %s3439_s20 = smov 88  }
  0x2c   :  { %s3441_s15 = smov 104   ;;  %s3442_s19 = smov 112  }
  0x2d   :  { %s3443_s0 = smov 120  }
  0xe1   :  { %v3566_v12 = vpop.f32.mrb[0].mxu0 }
  0xe2   :  { %v3568_v13 = vpop.f32.mrb[1].mxu0  ;;  %v292_v17 = vmul.f32 %v3566_v12, %v3566_v12  ;;  %v256_v22 = vsel %vm252_vm1, %v3566_v12, 0.0 }
  0xe3   :  { %v290_v14 = vmul.f32 %v3568_v13, %v3568_v13  ;;  %v3572_v15 = vpop.f32.mrb[2].mxu0  ;;  %v253_v18 = vsel %vm252_vm1, %v3568_v13, 0.0 }
  0xe4   :  { %v3574_v16 = vpop.f32.mrb[3].mxu0  ;;  %v293_v24 = vmul.f32 %v3572_v15, %v3572_v15  ;;  %v309_v28 = vsel %vm252_vm1, %v292_v17, 0.0  ;;  %v258_v29 = vsel %vm252_vm1, %v3572_v15, 0.0 }
  0xe5   :  { %v254_v19 = vsel %vm252_vm1, %v3574_v16, 0.0  ;;  %v291_v20 = vmul.f32 %v3574_v16, %v3574_v16  ;;  %v306_v23 = vsel %vm252_vm1, %v290_v14, 0.0 }
  0xe6   :  { %v255_v21 = vadd.f32 %v254_v19, %v253_v18  ;;  %v311_v34 = vsel %vm252_vm1, %v293_v24, 0.0 }
  0xe7   :  { %v307_v25 = vsel %vm252_vm1, %v291_v20, 0.0 }
  0xe8   :  { %v257_v26 = vadd.f32 %v256_v22, %v255_v21  ;;  %v308_v27 = vadd.f32 %v307_v25, %v306_v23 }
  0xe9   :  { %v3593_v30 = vpop.f32.mrb[4].mxu0 }
  0xea   :  { %v310_v31 = vadd.f32 %v309_v28, %v308_v27  ;;  %v3595_v32 = vpop.f32.mrb[5].mxu0  ;;  %v259_v33 = vadd.f32 %v258_v29, %v257_v26  ;;  %v296_v41 = vmul.f32 %v3593_v30, %v3593_v30  ;;  %v264_v47 = vsel %vm252_vm1, %v3593_v30, 0.0 }
  0xeb   :  { %v260_v35 = vsel %vm252_vm1, %v3595_v32, 0.0  ;;  %v294_v36 = vmul.f32 %v3595_v32, %v3595_v32  ;;  %v3602_v37 = vpop.f32.mrb[6].mxu0 }
  0xec   :  { %v261_v38 = vadd.f32 %v260_v35, %v259_v33  ;;  %v312_v39 = vadd.f32 %v311_v34, %v310_v31  ;;  %v3604_v40 = vpop.f32.mrb[7].mxu0  ;;  %v297_v48 = vmul.f32 %v3602_v37, %v3602_v37  ;;  %v317_v52 = vsel %vm252_vm1, %v296_v41, 0.0 }
  0xed   :  { %v313_v42 = vsel %vm252_vm1, %v294_v36, 0.0  ;;  %v262_v43 = vsel %vm252_vm1, %v3604_v40, 0.0  ;;  %v295_v44 = vmul.f32 %v3604_v40, %v3604_v40  ;;  %v266_v53 = vsel %vm252_vm1, %v3602_v37, 0.0 }
  0xee   :  { %v314_v45 = vadd.f32 %v313_v42, %v312_v39  ;;  %v263_v46 = vadd.f32 %v262_v43, %v261_v38  ;;  %v319_v58 = vsel %vm252_vm1, %v297_v48, 0.0 }
  0xef   :  { %v315_v49 = vsel %vm252_vm1, %v295_v44, 0.0 }
  0xf0   :  { %v265_v50 = vadd.f32 %v264_v47, %v263_v46  ;;  %v316_v51 = vadd.f32 %v315_v49, %v314_v45 }
  0xf1   :  { %v3621_v54 = vpop.f32.mrb[8].mxu0 }
  0xf2   :  { %v318_v55 = vadd.f32 %v317_v52, %v316_v51  ;;  %v3623_v56 = vpop.f32.mrb[9].mxu0  ;;  %v267_v57 = vadd.f32 %v266_v53, %v265_v50  ;;  %v300_v1 = vmul.f32 %v3621_v54, %v3621_v54  ;;  %v272_v7 = vsel %vm252_vm1, %v3621_v54, 0.0 }
  0xf3   :  { %v268_v59 = vsel %vm252_vm1, %v3623_v56, 0.0  ;;  %v298_v60 = vmul.f32 %v3623_v56, %v3623_v56  ;;  %v3630_v61 = vpop.f32.mrb[10].mxu0 }
  0xf4   :  { %v269_v62 = vadd.f32 %v268_v59, %v267_v57  ;;  %v320_v63 = vadd.f32 %v319_v58, %v318_v55  ;;  %v3632_v0 = vpop.f32.mrb[11].mxu0  ;;  %v301_v8 = vmul.f32 %v3630_v61, %v3630_v61  ;;  %v325_v14 = vsel %vm252_vm1, %v300_v1, 0.0 }
  0xf5   :  { %v321_v2 = vsel %vm252_vm1, %v298_v60, 0.0  ;;  %v270_v3 = vsel %vm252_vm1, %v3632_v0, 0.0  ;;  %v299_v4 = vmul.f32 %v3632_v0, %v3632_v0  ;;  %v274_v17 = vsel %vm252_vm1, %v3630_v61, 0.0 }
  0xf6   :  { %v322_v5 = vadd.f32 %v321_v2, %v320_v63  ;;  %v271_v6 = vadd.f32 %v270_v3, %v269_v62  ;;  %v327_v22 = vsel %vm252_vm1, %v301_v8, 0.0  ;;  %v354_v8 = vlaneseq }
  0xf7   :  { %v323_v9 = vsel %vm252_vm1, %v299_v4, 0.0 }
  0xf8   :  { %v273_v10 = vadd.f32 %v272_v7, %v271_v6  ;;  %v324_v11 = vadd.f32 %v323_v9, %v322_v5  ;;  %v355_v9 = vshrl.u32 %v354_v8, 7 }
  0xf9   :  { %v3649_v18 = vpop.f32.mrb[12].mxu0 }
  0xfa   :  { %v326_v19 = vadd.f32 %v325_v14, %v324_v11  ;;  %v3651_v20 = vpop.f32.mrb[13].mxu0  ;;  %v275_v21 = vadd.f32 %v274_v17, %v273_v10  ;;  %v304_v29 = vmul.f32 %v3649_v18, %v3649_v18  ;;  %v280_v38 = vsel %vm252_vm1, %v3649_v18, 0.0  ;;  %v70_v10 = vld [vmem:[%s4318_s2] sm:$0x1] }
  0xfb   :  { %v276_v23 = vsel %vm252_vm1, %v3651_v20, 0.0  ;;  %v302_v24 = vmul.f32 %v3651_v20, %v3651_v20  ;;  %v3658_v25 = vpop.f32.mrb[14].mxu0  ;;  %v3676_v11 = vsub.s32 0, %v355_v9 }
  0xfc   :  { %v277_v26 = vadd.f32 %v276_v23, %v275_v21  ;;  %v328_v27 = vadd.f32 %v327_v22, %v326_v19  ;;  %v240_v28 = vpop.f32.mrb[15].mxu0  ;;  %v305_v39 = vmul.f32 %v3658_v25, %v3658_v25  ;;  %v333_v44 = vsel %vm252_vm1, %v304_v29, 0.0  ;;  %v71_v19 = vld [vmem:[%s4319_s3] sm:$0x1] }
  0xfd   :  { %v329_v31 = vsel %vm252_vm1, %v302_v24, 0.0  ;;  %v278_v33 = vsel %vm252_vm1, %v240_v28, 0.0  ;;  %v303_v34 = vmul.f32 %v240_v28, %v240_v28  ;;  %v282_v45 = vsel %vm252_vm1, %v3658_v25, 0.0 }
  0xfe   :  { %v330_v35 = vadd.f32 %v329_v31, %v328_v27  ;;  %v279_v36 = vadd.f32 %v278_v33, %v277_v26  ;;  %v335_v48 = vsel %vm252_vm1, %v305_v39, 0.0 }
  0xff   :  { %v331_v41 = vsel %vm252_vm1, %v303_v34, 0.0 }
 0x100   :  { %v281_v42 = vadd.f32 %v280_v38, %v279_v36  ;;  %v332_v43 = vadd.f32 %v331_v41, %v330_v35 }
 0x102   :  { %v283_v46 = vadd.f32 %v282_v45, %v281_v42  ;;  %v334_v47 = vadd.f32 %v333_v44, %v332_v43 }
 0x104   :  { %v284_v49 = vrot.slane %v283_v46, 4  ;;  %v336_v50 = vadd.f32 %v335_v48, %v334_v47 }
 0x106   :  { %v285_v51 = vadd.f32 %v284_v49, %v283_v46  ;;  %v337_v52 = vrot.slane %v336_v50, 4 }
 0x108   :  { %v286_v53 = vrot.slane %v285_v51, 2  ;;  %v338_v55 = vadd.f32 %v337_v52, %v336_v50 }
 0x10a   :  { %v287_v57 = vadd.f32 %v286_v53, %v285_v51  ;;  %v339_v58 = vrot.slane %v338_v55, 2 }
 0x10c   :  { %v288_v59 = vrot.slane %v287_v57, 1  ;;  %v340_v60 = vadd.f32 %v339_v58, %v338_v55 }
 0x10e   :  { %v289_v62 = vadd.f32 %v288_v59, %v287_v57  ;;  %v341_v63 = vrot.slane %v340_v60, 1 }
 0x110   :  { %v342_v1 = vadd.f32 %v341_v63, %v340_v60  ;;  %v343_v2 = vmul.f32 0.0078125, %v289_v62 }
 0x112   :  { %v344_v3 = vmul.f32 0.0078125, %v342_v1  ;;  %v345_v4 = vmul.f32 %v343_v2, %v343_v2 }
 0x114   :  { %v346_v5 = vsub.f32 %v344_v3, %v345_v4 }
 0x116   :  { %v347_v6 = vmax.f32 %v346_v5, 0.0 }
 0x118   :  { %v348_v7 = vadd.f32 1e-05, %v347_v6 }
 0x11a   :  { %3397 = vrsqrt.f32 %v348_v7 }
 0x124   :  { %v3398_v14 = vpop.eup %3397 }
 0x125   :  { %v350_v17 = vmul.f32 %v3398_v14, %v70_v10 }
 0x127   :  { %v351_v21 = vmul.f32 %v350_v17, %v343_v2  ;;  %v3682_v22 = vrot.slane %v350_v17, %v3676_v11 }
 0x129   :  { %v352_v23 = vsub.f32 %v71_v19, %v351_v21  ;;  %v372_v24 = vmul.f32 %v3682_v22, %v240_v28  ;;  %v359_v26 = vmul.f32 %v3682_v22, %v3568_v13  ;;  %v360_v27 = vmul.f32 %v3682_v22, %v3574_v16 }
 0x12a   :  { %v361_v29 = vmul.f32 %v3566_v12, %v3682_v22  ;;  %v362_v31 = vmul.f32 %v3572_v15, %v3682_v22  ;;  %v363_v33 = vmul.f32 %v3682_v22, %v3595_v32  ;;  %v364_v34 = vmul.f32 %v3682_v22, %v3604_v40 }
 0x12b   :  { %v3698_v28 = vrot.slane %v352_v23, %v3676_v11  ;;  %v365_v13 = vmul.f32 %v3593_v30, %v3682_v22  ;;  %v366_v16 = vmul.f32 %v3602_v37, %v3682_v22  ;;  %v367_v12 = vmul.f32 %v3682_v22, %v3623_v56 }
 0x12c   :  { %v368_v15 = vmul.f32 %v3682_v22, %v3632_v0  ;;  %v369_v32 = vmul.f32 %v3621_v54, %v3682_v22  ;;  %v370_v40 = vmul.f32 %v3630_v61, %v3682_v22  ;;  %v371_v35 = vmul.f32 %v3682_v22, %v3651_v20 }
 0x12d   :  { %v3715_v30 = vadd.f32 %v3698_v28, %v372_v24  ;;  %v381_v37 = vadd.f32 %v3698_v28, %v359_v26  ;;  %v382_v36 = vadd.f32 %v3698_v28, %v360_v27  ;;  %v383_v56 = vadd.f32 %v3698_v28, %v361_v29 }
 0x12e   :  { %v384_v0 = vadd.f32 %v3698_v28, %v362_v31  ;;  %v385_v38 = vadd.f32 %v3698_v28, %v363_v33  ;;  %v386_v54 = vadd.f32 %v3698_v28, %v364_v34  ;;  %v387_v61 = vadd.f32 %v3698_v28, %v365_v13 }
 0x12f   :  { %vm397_vm2 = vcmp.ge.f32.partialorder %v381_v37, 0.0  ;;  %vm398_vm3 = vcmp.ge.f32.partialorder %v382_v36, 0.0  ;;  %v413_v20 = vmul.f32 0.2, %v381_v37  ;;  %v414_v39 = vmul.f32 0.2, %v382_v36 }
 0x130   :  { %vm399_vm4 = vcmp.ge.f32.partialorder %v383_v56, 0.0  ;;  %vm400_vm5 = vcmp.ge.f32.partialorder %v384_v0, 0.0  ;;  %v415_v41 = vmul.f32 0.2, %v383_v56  ;;  %v416_v42 = vmul.f32 0.2, %v384_v0 }
 0x131   :  { %v429_v43 = vsel %vm397_vm2, %v381_v37, %v413_v20  ;;  %v430_v44 = vsel %vm398_vm3, %v382_v36, %v414_v39  ;;  %vm401_vm6 = vcmp.ge.f32.partialorder %v385_v38, 0.0  ;;  %vm402_vm7 = vcmp.ge.f32.partialorder %v386_v54, 0.0  ;;  %v3313_v37 = vld [vmem:[%s4320_s4 + $0x38] sm:$0xff]   ;;  %v3314_v36 = vld [vmem:[%s4320_s4 + $0x40] sm:$0xff]   ;;  %v3320_v20 = vld [vmem:[%s4320_s4 + $0x70] sm:$0xff]  }
 0x132   :  { %v447_v45 = vpack.c.bf16 %v430_v44, %v429_v43  ;;  %v431_v46 = vsel %vm399_vm4, %v383_v56, %v415_v41  ;;  %v432_v47 = vsel %vm400_vm5, %v384_v0, %v416_v42  ;;  %v417_v48 = vmul.f32 0.2, %v385_v38  ;;  %v3315_v56 = vld [vmem:[%s4320_s4 + $0x48] sm:$0xff]   ;;  %v3316_v0 = vld [vmem:[%s4320_s4 + $0x50] sm:$0xff]   ;;  %v3321_v39 = vld [vmem:[%s4320_s4 + $0x78] sm:$0xff]  }
 0x133   :  { %v448_v49 = vpack.c.bf16 %v432_v47, %v431_v46  ;;  %v418_v50 = vmul.f32 0.2, %v386_v54  ;;  %v388_v51 = vadd.f32 %v3698_v28, %v366_v16  ;;  %vm403_vm8 = vcmp.ge.f32.partialorder %v387_v61, 0.0  ;;  %v3322_v41 = vld [vmem:[%s4320_s4 + $0x80] sm:$0xff]   ;;  %v3323_v42 = vld [vmem:[%s4320_s4 + $0x88] sm:$0xff]   ;;  %v3324_v43 = vld [vmem:[%s4320_s4 + $0x90] sm:$0xff]  }
 0x134   :  { %2862 = vmatprep.subr.bf16.mxu1 %v447_v45  ;;  %v433_v52 = vsel %vm401_vm6, %v385_v38, %v417_v48  ;;  %v419_v53 = vmul.f32 0.2, %v387_v61  ;;  %v389_v55 = vadd.f32 %v3698_v28, %v367_v12  ;;  %v390_v57 = vadd.f32 %v3698_v28, %v368_v15  ;;  %v3317_v38 = vld [vmem:[%s4320_s4 + $0x58] sm:$0xff]   ;;  %v3327_v46 = vld [vmem:[%s4320_s4 + $0xa8] sm:$0xff]   ;;  %v3328_v47 = vld [vmem:[%s4320_s4 + $0xb0] sm:$0xff]  }
 0x135   :  { %2863 = vmatpush3.bf16.msra.mxu1 %v447_v45  ;;  %v434_v58 = vsel %vm402_vm7, %v386_v54, %v418_v50  ;;  %vm404_vm9 = vcmp.ge.f32.partialorder %v388_v51, 0.0  ;;  %v420_v59 = vmul.f32 0.2, %v388_v51  ;;  %v391_v60 = vadd.f32 %v3698_v28, %v369_v32  ;;  %v3318_v54 = vld [vmem:[%s4320_s4 + $0x60] sm:$0xff]   ;;  %v3325_v44 = vld [vmem:[%s4320_s4 + $0x98] sm:$0xff]   ;;  %v3331_v50 = vld [vmem:[%s4320_s4 + $0xc8] sm:$0xff]  }
 0x136   :  { %2864 = vmatprep.subr.bf16.mxu1 %v448_v49  ;;  %v449_v62 = vpack.c.bf16 %v434_v58, %v433_v52  ;;  %v435_v63 = vsel %vm403_vm8, %v387_v61, %v419_v53  ;;  %vm405_vm10 = vcmp.ge.f32.partialorder %v389_v55, 0.0  ;;  %vm406_vm11 = vcmp.ge.f32.partialorder %v390_v57, 0.0  ;;  %v3319_v61 = vld [vmem:[%s4320_s4 + $0x68] sm:$0xff]   ;;  %v3326_v45 = vld [vmem:[%s4320_s4 + $0xa0] sm:$0xff]   ;;  %v3329_v48 = vld [vmem:[%s4320_s4 + $0xb8] sm:$0xff]  }
 0x137   :  { %v436_v1 = vsel %vm404_vm9, %v388_v51, %v420_v59  ;;  %v421_v2 = vmul.f32 0.2, %v389_v55  ;;  %v422_v3 = vmul.f32 0.2, %v390_v57  ;;  %v392_v4 = vadd.f32 %v3698_v28, %v370_v40  ;;  %v3310_v40 = vld [vmem:[%s4320_s4 + $0x20] sm:$0xff]   ;;  %v3332_v51 = vld [vmem:[%s4320_s4 + $0xd0] sm:$0xff]  }
 0x138   :  { %v450_v5 = vpack.c.bf16 %v436_v1, %v435_v63  ;;  %vm407_vm12 = vcmp.ge.f32.partialorder %v391_v60, 0.0  ;;  %v423_v6 = vmul.f32 0.2, %v391_v60  ;;  %v393_v7 = vadd.f32 %v3698_v28, %v371_v35  ;;  %v3311_v35 = vld [vmem:[%s4320_s4 + $0x28] sm:$0xff]   ;;  %v3333_v52 = vld [vmem:[%s4320_s4 + $0xd8] sm:$0xff]   ;;  %v3334_v53 = vld [vmem:[%s4320_s4 + $0xe0] sm:$0xff]  }
 0x139   :  { %2865 = vmatpush3.bf16.msra.mxu1 %v448_v49  ;;  %v437_v8 = vsel %vm405_vm10, %v389_v55, %v421_v2  ;;  %v438_v9 = vsel %vm406_vm11, %v390_v57, %v422_v3  ;;  %vm408_vm13 = vcmp.ge.f32.partialorder %v392_v4, 0.0  ;;  %v424_v10 = vmul.f32 0.2, %v392_v4  ;;  %v3330_v49 = vld [vmem:[%s4320_s4 + $0xc0] sm:$0xff]   ;;  %v3335_v55 = vld [vmem:[%s4320_s4 + $0xe8] sm:$0xff]   ;;  %v3336_v57 = vld [vmem:[%s4320_s4 + $0xf0] sm:$0xff]  }
 0x13a   :  { %2866 = vmatprep.subr.bf16.mxu1 %v449_v62  ;;  %v451_v14 = vpack.c.bf16 %v438_v9, %v437_v8  ;;  %v439_v17 = vsel %vm407_vm12, %v391_v60, %v423_v6  ;;  %vm409_vm14 = vcmp.ge.f32.partialorder %v393_v7, 0.0  ;;  %vm410_vm15 = vcmp.ge.f32.partialorder %v3715_v30, 0.0  ;;  %v3337_v58 = vld [vmem:[%s4320_s4 + $0xf8] sm:$0xff]  }
 0x13b   :  { %v440_v19 = vsel %vm408_vm13, %v392_v4, %v424_v10  ;;  %v425_v21 = vmul.f32 0.2, %v393_v7  ;;  %v426_v23 = vmul.f32 0.2, %v3715_v30  ;;  %v373_v24 = vmul.f32 %v3649_v18, %v3682_v22 }
 0x13c   :  { %v452_v26 = vpack.c.bf16 %v440_v19, %v439_v17  ;;  %v374_v27 = vmul.f32 %v3658_v25, %v3682_v22  ;;  %v3307_v25 = vld [vmem:[%s4320_s4 + $0x8] sm:$0xff]   ;;  %v3308_v22 = vld [vmem:[%s4320_s4 + $0x10] sm:$0xff]   ;;  %vm1244_vm4 = vcmask 130048   ;;  %vm1249_vm5 = vcmask 195584  }
 0x13d   :  { %2867 = vmatpush3.bf16.msra.mxu1 %v449_v62  ;;  %v441_v29 = vsel %vm409_vm14, %v393_v7, %v425_v21  ;;  %v442_v31 = vsel %vm410_vm15, %v3715_v30, %v426_v23  ;;  %v395_v33 = vadd.f32 %v3698_v28, %v373_v24  ;;  %v3312_v30 = vld [vmem:[%s4320_s4 + $0x30] sm:$0xff]   ;;  %vm1254_vm6 = vcmask 261120  }
 0x13e   :  { %2868 = vmatprep.subr.bf16.mxu1 %v450_v5  ;;  %v453_v34 = vpack.c.bf16 %v442_v31, %v441_v29  ;;  %v396_v13 = vadd.f32 %v3698_v28, %v374_v27  ;;  %v3309_v28 = vld [vmem:[%s4320_s4 + $0x18] sm:$0xff]   ;;  %s3430_s4 = smov 16   ;;  %vm1259_vm7 = vcmask 326656   ;;  %vm1268_vm8 = vcmask 457728  }
 0x13f   :  { %vm411_vm2 = vcmp.ge.f32.partialorder %v395_v33, 0.0  ;;  %v427_v16 = vmul.f32 0.2, %v395_v33  ;;  %vm1278_vm9 = vcmask 588800   ;;  %vm1283_vm10 = vcmask 654336  }
 0x140   :  { %vm412_vm3 = vcmp.ge.f32.partialorder %v396_v13, 0.0  ;;  %v428_v12 = vmul.f32 0.2, %v396_v13  ;;  %vm1288_vm11 = vcmask 719872   ;;  %vm1293_vm12 = vcmask 785408  }
 0x141   :  { %2869 = vmatpush3.bf16.msra.mxu1 %v450_v5  ;;  %v443_v18 = vsel %vm411_vm2, %v395_v33, %v427_v16  ;;  %vm1298_vm13 = vcmask 850944   ;;  %vm1303_vm14 = vcmask 916480   ;;  %vm1308_vm15 = vcmask 982016  }
 0x142   :  { %2870 = vmatprep.subr.bf16.mxu1 %v451_v14  ;;  %v444_v15 = vsel %vm412_vm3, %v396_v13, %v428_v12 }
 0x143   :  { %v454_v32 = vpack.c.bf16 %v444_v15, %v443_v18 }
 0x145   :  { %2871 = vmatpush3.bf16.msra.mxu1 %v451_v14 }
 0x146   :  { %2872 = vmatprep.subr.bf16.mxu1 %v452_v26 }
 0x149   :  { %2873 = vmatpush3.bf16.msra.mxu1 %v452_v26 }
 0x14a   :  { %2874 = vmatprep.subr.bf16.mxu1 %v453_v34 }
 0x14d   :  { %2875 = vmatpush3.bf16.msra.mxu1 %v453_v34 }
 0x14e   :  { %2876 = vmatprep.subr.bf16.mxu1 %v454_v32 }
 0x151   :  { %2877 = vmatpush3.bf16.msra.mxu1 %v454_v32 }
 0x154   :  { %2879 = vmatmul.mubr.bf16.vlgmr.msra.gmra.mrb[0].mxu1 %v3307_v25 }
 0x155   :  { %2882 = vmatprep.mubr.bf16.mxu1 %v3308_v22 }
 0x15c   :  { %2883 = vmatmul.mubr.bf16.gmra.mrb[4].mxu1 %v3309_v28 }
 0x15d   :  { %2886 = vmatprep.mubr.bf16.mxu1 %v3310_v40 }
 0x164   :  { %2887 = vmatmul.mubr.bf16.gmra.mrb[8].mxu1 %v3311_v35 }
 0x165   :  { %2890 = vmatprep.mubr.bf16.mxu1 %v3312_v30 }
 0x16c   :  { %2891 = vmatmul.mubr.bf16.gmra.mrb[12].mxu1 %v3313_v37 }
 0x16d   :  { %2894 = vmatprep.mubr.bf16.mxu1 %v3314_v36 }
 0x174   :  { %2895 = vmatmul.mubr.bf16.gmra.mrb[16].mxu1 %v3315_v56 }
 0x175   :  { %2898 = vmatprep.mubr.bf16.mxu1 %v3316_v0 }
 0x17c   :  { %2899 = vmatmul.mubr.bf16.gmra.mrb[20].mxu1 %v3317_v38 }
 0x17d   :  { %2902 = vmatprep.mubr.bf16.mxu1 %v3318_v54 }
 0x184   :  { %2903 = vmatmul.mubr.bf16.gmra.mrb[24].mxu1 %v3319_v61 }
 0x185   :  { %2906 = vmatprep.mubr.bf16.mxu1 %v3320_v20 }
 0x18c   :  { %2907 = vmatmul.mubr.bf16.gmra.mrb[28].mxu1 %v3321_v39 }
 0x18d   :  { %2910 = vmatprep.mubr.bf16.mxu1 %v3322_v41 }
 0x194   :  { %2911 = vmatmul.mubr.bf16.gmra.mrb[32].mxu1 %v3323_v42 }
 0x195   :  { %2914 = vmatprep.mubr.bf16.mxu1 %v3324_v43 }
 0x19c   :  { %2915 = vmatmul.mubr.bf16.gmra.mrb[36].mxu1 %v3325_v44 }
 0x19d   :  { %2918 = vmatprep.mubr.bf16.mxu1 %v3326_v45 }
 0x1a4   :  { %2919 = vmatmul.mubr.bf16.gmra.mrb[40].mxu1 %v3327_v46 }
 0x1a5   :  { %2922 = vmatprep.mubr.bf16.mxu1 %v3328_v47 }
 0x1ac   :  { %2923 = vmatmul.mubr.bf16.gmra.mrb[44].mxu1 %v3329_v48 }
 0x1ad   :  { %2926 = vmatprep.mubr.bf16.mxu1 %v3330_v49 }
 0x1b4   :  { %2927 = vmatmul.mubr.bf16.gmra.mrb[48].mxu1 %v3331_v50 }
 0x1b5   :  { %2930 = vmatprep.mubr.bf16.mxu1 %v3332_v51 }
 0x1bc   :  { %2931 = vmatmul.mubr.bf16.gmra.mrb[52].mxu1 %v3333_v52 }
 0x1bd   :  { %2934 = vmatprep.mubr.bf16.mxu1 %v3334_v53 }
 0x1c4   :  { %2935 = vmatmul.mubr.bf16.gmra.mrb[56].mxu1 %v3335_v55 }
 0x1c5   :  { %2938 = vmatprep.mubr.bf16.mxu1 %v3336_v57 }
 0x1cc   :  { %2939 = vmatmul.mubr.bf16.gmra.mrb[60].mxu1 %v3337_v58 }
 0x227   :  { %v3832_v59 = vpop.f32.mrb[0].mxu1 }
 0x228   :  { %v3834_v60 = vpop.f32.mrb[1].mxu1 }
 0x229   :  { %v3836_v62 = vpop.f32.mrb[2].mxu1 }
 0x22a   :  { %v3838_v63 = vpop.f32.mrb[3].mxu1 }
 0x22f   :  { %v2884_v1 = vpop.f32.mrb[4].mxu1 }
 0x230   :  { %v761_v2 = vpop.f32.mrb[5].mxu1 }
 0x231   :  { %v2885_v3 = vpop.f32.mrb[6].mxu1 }
 0x232   :  { %v3040_v4 = vpack.i.bf16 %v2885_v3, %v2884_v1  ;;  %v764_v5 = vpop.f32.mrb[7].mxu1  ;;  %v3338_v1 = vld [vmem:[%s4321_s5] sm:$0xff]  }
 0x233   :  { %v3045_v6 = vpack.i.bf16 %v764_v5, %v761_v2  ;;  %2942 = vmatprep.subr.bf16.mxu0 %v3338_v1 }
 0x234   :  { %3041 = vrot.lane.b32.xlu0 %v3040_v4, %s3429_s23  ;;  %2943 = vmatpush3.bf16.msra.mxu0 %v3338_v1 }
 0x237   :  { %v2888_v7 = vpop.f32.mrb[8].mxu1 }
 0x238   :  { %3046 = vrot.lane.b32.xlu0 %v3045_v6, %s3429_s23  ;;  %v777_v8 = vpop.f32.mrb[9].mxu1 }
 0x239   :  { %v2889_v9 = vpop.f32.mrb[10].mxu1 }
 0x23a   :  { %v3050_v10 = vpack.i.bf16 %v2889_v9, %v2888_v7  ;;  %v780_v14 = vpop.f32.mrb[11].mxu1  ;;  %v3340_v9 = vld [vmem:[%s4321_s5 + $0x10] sm:$0xff]  }
 0x23b   :  { %v3055_v17 = vpack.i.bf16 %v780_v14, %v777_v8  ;;  %v3339_v8 = vld [vmem:[%s4321_s5 + $0x8] sm:$0xff]  }
 0x23c   :  { %3051 = vrot.lane.b32.xlu1 %v3050_v10, %s3430_s4  ;;  %2944 = vmatprep.subr.bf16.mxu0 %v3339_v8 }
 0x23d   :  { %2945 = vmatpush3.bf16.msra.mxu0 %v3339_v8 }
 0x23e   :  { %2946 = vmatprep.subr.bf16.mxu0 %v3340_v9 }
 0x23f   :  { %v2892_v19 = vpop.f32.mrb[12].mxu1 }
 0x240   :  { %3056 = vrot.lane.b32.xlu1 %v3055_v17, %s3430_s4  ;;  %v793_v21 = vpop.f32.mrb[13].mxu1 }
 0x241   :  { %v2893_v23 = vpop.f32.mrb[14].mxu1  ;;  %2947 = vmatpush3.bf16.msra.mxu0 %v3340_v9 }
 0x242   :  { %v3060_v24 = vpack.i.bf16 %v2893_v23, %v2892_v19  ;;  %v796_v26 = vpop.f32.mrb[15].mxu1 }
 0x243   :  { %v3065_v27 = vpack.i.bf16 %v796_v26, %v793_v21  ;;  %v3342_v26 = vld [vmem:[%s4321_s5 + $0x20] sm:$0xff]  }
 0x244   :  { %3061 = vrot.lane.b32.xlu1 %v3060_v24, %s3431_s24  ;;  %v3341_v24 = vld [vmem:[%s4321_s5 + $0x18] sm:$0xff]  }
 0x245   :  { %3066 = vrot.lane.b32.xlu0 %v3065_v27, %s3431_s24  ;;  %s3440_s24 = smov 96   ;;  %2948 = vmatprep.subr.bf16.mxu0 %v3341_v24 }
 0x246   :  { %2949 = vmatpush3.bf16.msra.mxu0 %v3341_v24 }
 0x247   :  { %v2896_v29 = vpop.f32.mrb[16].mxu1  ;;  %2950 = vmatprep.subr.bf16.mxu0 %v3342_v26 }
 0x248   :  { %v809_v31 = vpop.f32.mrb[17].mxu1 }
 0x249   :  { %v2897_v33 = vpop.f32.mrb[18].mxu1 }
 0x24a   :  { %v3070_v34 = vpack.i.bf16 %v2897_v33, %v2896_v29  ;;  %v812_v13 = vpop.f32.mrb[19].mxu1  ;;  %2951 = vmatpush3.bf16.msra.mxu0 %v3342_v26 }
 0x24b   :  { %v3075_v16 = vpack.i.bf16 %v812_v13, %v809_v31 }
 0x24c   :  { %3071 = vrot.lane.b32.xlu1 %v3070_v34, %s3432_s25 }
 0x24d   :  { %3076 = vrot.lane.b32.xlu0 %v3075_v16, %s3432_s25  ;;  %v3343_v16 = vld [vmem:[%s4321_s5 + $0x28] sm:$0xff]  }
 0x24e   :  { %2952 = vmatprep.subr.bf16.mxu0 %v3343_v16 }
 0x24f   :  { %v2900_v12 = vpop.f32.mrb[20].mxu1  ;;  %2953 = vmatpush3.bf16.msra.mxu0 %v3343_v16 }
 0x250   :  { %v825_v18 = vpop.f32.mrb[21].mxu1 }
 0x251   :  { %v2901_v15 = vpop.f32.mrb[22].mxu1 }
 0x252   :  { %v3080_v32 = vpack.i.bf16 %v2901_v15, %v2900_v12  ;;  %v828_v25 = vpop.f32.mrb[23].mxu1  ;;  %v3344_v12 = vld [vmem:[%s4321_s5 + $0x30] sm:$0xff]  }
 0x253   :  { %v3085_v22 = vpack.i.bf16 %v828_v25, %v825_v18  ;;  %2954 = vmatprep.subr.bf16.mxu0 %v3344_v12 }
 0x254   :  { %3081 = vrot.lane.b32.xlu1 %v3080_v32, %s3433_s26  ;;  %2955 = vmatpush3.bf16.msra.mxu0 %v3344_v12 }
 0x255   :  { %3086 = vrot.lane.b32.xlu0 %v3085_v22, %s3433_s26 }
 0x257   :  { %v2904_v28 = vpop.f32.mrb[24].mxu1 }
 0x258   :  { %v841_v40 = vpop.f32.mrb[25].mxu1 }
 0x259   :  { %v2905_v35 = vpop.f32.mrb[26].mxu1 }
 0x25a   :  { %v3090_v30 = vpack.i.bf16 %v2905_v35, %v2904_v28  ;;  %v844_v37 = vpop.f32.mrb[27].mxu1 }
 0x25b   :  { %v3095_v36 = vpack.i.bf16 %v844_v37, %v841_v40  ;;  %v3345_v40 = vld [vmem:[%s4321_s5 + $0x38] sm:$0xff]  }
 0x25c   :  { %3091 = vrot.lane.b32.xlu1 %v3090_v30, %s3434_s1  ;;  %2956 = vmatprep.subr.bf16.mxu0 %v3345_v40 }
 0x25d   :  { %3096 = vrot.lane.b32.xlu0 %v3095_v36, %s3434_s1  ;;  %2957 = vmatpush3.bf16.msra.mxu0 %v3345_v40 }
 0x25f   :  { %v2908_v56 = vpop.f32.mrb[28].mxu1 }
 0x260   :  { %v857_v0 = vpop.f32.mrb[29].mxu1 }
 0x261   :  { %v2909_v38 = vpop.f32.mrb[30].mxu1 }
 0x262   :  { %v3100_v54 = vpack.i.bf16 %v2909_v38, %v2908_v56  ;;  %v860_v61 = vpop.f32.mrb[31].mxu1 }
 0x263   :  { %v3105_v20 = vpack.i.bf16 %v860_v61, %v857_v0 }
 0x264   :  { %3101 = vrot.lane.b32.xlu1 %v3100_v54, %s3435_s27 }
 0x265   :  { %3106 = vrot.lane.b32.xlu0 %v3105_v20, %s3435_s27 }
 0x267   :  { %v2912_v39 = vpop.f32.mrb[32].mxu1 }
 0x268   :  { %v873_v41 = vpop.f32.mrb[33].mxu1 }
 0x269   :  { %v2913_v42 = vpop.f32.mrb[34].mxu1 }
 0x26a   :  { %v3110_v43 = vpack.i.bf16 %v2913_v42, %v2912_v39  ;;  %v876_v44 = vpop.f32.mrb[35].mxu1 }
 0x26b   :  { %v3115_v45 = vpack.i.bf16 %v876_v44, %v873_v41 }
 0x26c   :  { %3111 = vrot.lane.b32.xlu1 %v3110_v43, %s3436_s28 }
 0x26d   :  { %3116 = vrot.lane.b32.xlu0 %v3115_v45, %s3436_s28 }
 0x26f   :  { %v2916_v46 = vpop.f32.mrb[36].mxu1 }
 0x270   :  { %v889_v47 = vpop.f32.mrb[37].mxu1 }
 0x271   :  { %v2917_v48 = vpop.f32.mrb[38].mxu1 }
 0x272   :  { %v3120_v49 = vpack.i.bf16 %v2917_v48, %v2916_v46  ;;  %v892_v50 = vpop.f32.mrb[39].mxu1 }
 0x273   :  { %v3125_v51 = vpack.i.bf16 %v892_v50, %v889_v47 }
 0x274   :  { %3121 = vrot.lane.b32.xlu1 %v3120_v49, %s3437_s29 }
 0x275   :  { %3126 = vrot.lane.b32.xlu0 %v3125_v51, %s3437_s29 }
 0x277   :  { %v2920_v52 = vpop.f32.mrb[40].mxu1 }
 0x278   :  { %v905_v53 = vpop.f32.mrb[41].mxu1 }
 0x279   :  { %v2921_v55 = vpop.f32.mrb[42].mxu1 }
 0x27a   :  { %v3130_v57 = vpack.i.bf16 %v2921_v55, %v2920_v52  ;;  %v908_v58 = vpop.f32.mrb[43].mxu1 }
 0x27b   :  { %v3135_v2 = vpack.i.bf16 %v908_v58, %v905_v53 }
 0x27c   :  { %3131 = vrot.lane.b32.xlu1 %v3130_v57, %s3438_s16 }
 0x27d   :  { %3136 = vrot.lane.b32.xlu0 %v3135_v2, %s3438_s16 }
 0x27f   :  { %v2924_v3 = vpop.f32.mrb[44].mxu1 }
 0x280   :  { %v921_v4 = vpop.f32.mrb[45].mxu1 }
 0x281   :  { %v2925_v5 = vpop.f32.mrb[46].mxu1 }
 0x282   :  { %v3140_v6 = vpack.i.bf16 %v2925_v5, %v2924_v3  ;;  %v924_v7 = vpop.f32.mrb[47].mxu1 }
 0x283   :  { %v3145_v10 = vpack.i.bf16 %v924_v7, %v921_v4 }
 0x284   :  { %3141 = vrot.lane.b32.xlu1 %v3140_v6, %s3439_s20 }
 0x285   :  { %3146 = vrot.lane.b32.xlu0 %v3145_v10, %s3439_s20 }
 0x287   :  { %v2928_v14 = vpop.f32.mrb[48].mxu1 }
 0x288   :  { %v937_v17 = vpop.f32.mrb[49].mxu1 }
 0x289   :  { %v2929_v19 = vpop.f32.mrb[50].mxu1 }
 0x28a   :  { %v3150_v21 = vpack.i.bf16 %v2929_v19, %v2928_v14  ;;  %v940_v23 = vpop.f32.mrb[51].mxu1 }
 0x28b   :  { %v3155_v27 = vpack.i.bf16 %v940_v23, %v937_v17 }
 0x28c   :  { %3151 = vrot.lane.b32.xlu1 %v3150_v21, %s3440_s24 }
 0x28d   :  { %3156 = vrot.lane.b32.xlu0 %v3155_v27, %s3440_s24 }
 0x28f   :  { %v2932_v29 = vpop.f32.mrb[52].mxu1 }
 0x290   :  { %v953_v31 = vpop.f32.mrb[53].mxu1 }
 0x291   :  { %v2933_v33 = vpop.f32.mrb[54].mxu1 }
 0x292   :  { %v3160_v34 = vpack.i.bf16 %v2933_v33, %v2932_v29  ;;  %v956_v13 = vpop.f32.mrb[55].mxu1 }
 0x293   :  { %v3165_v18 = vpack.i.bf16 %v956_v13, %v953_v31 }
 0x294   :  { %3161 = vrot.lane.b32.xlu1 %v3160_v34, %s3441_s15 }
 0x295   :  { %3166 = vrot.lane.b32.xlu0 %v3165_v18, %s3441_s15 }
 0x297   :  { %v2936_v15 = vpop.f32.mrb[56].mxu1 }
 0x298   :  { %v969_v32 = vpop.f32.mrb[57].mxu1 }
 0x299   :  { %v2937_v25 = vpop.f32.mrb[58].mxu1 }
 0x29a   :  { %v3170_v22 = vpack.i.bf16 %v2937_v25, %v2936_v15  ;;  %v972_v28 = vpop.f32.mrb[59].mxu1 }
 0x29b   :  { %v3175_v35 = vpack.i.bf16 %v972_v28, %v969_v32 }
 0x29c   :  { %3171 = vrot.lane.b32.xlu1 %v3170_v22, %s3442_s19 }
 0x29d   :  { %3176 = vrot.lane.b32.xlu0 %v3175_v35, %s3442_s19 }
 0x29f   :  { %v2940_v30 = vpop.f32.mrb[60].mxu1 }
 0x2a0   :  { %v985_v37 = vpop.f32.mrb[61].mxu1 }
 0x2a1   :  { %v2941_v36 = vpop.f32.mrb[62].mxu1 }
 0x2a2   :  { %v3185_v56 = vpack.i.bf16 %v2941_v36, %v2940_v30  ;;  %v988_v0 = vpop.f32.mrb[63].mxu1 }
 0x2a3   :  { %v3180_v38 = vpack.i.bf16 %v988_v0, %v985_v37 }
 0x2a4   :  { %3186 = vrot.lane.b32.xlu1 %v3185_v56, %s3443_s0 }
 0x2a5   :  { %3181 = vrot.lane.b32.xlu0 %v3180_v38, %s3443_s0 }
 0x2a6   :  { %v3042_v61 = vpop.permute.xlu0 %3041 }
 0x2a7   :  { %v3044_v52 = vunpack.i.h.bf16 %v3042_v61  ;;  %v3043_v53 = vunpack.i.l.bf16 %v3042_v61 }
 0x2a9   :  { %v1243_v6 = vsel %vm252_vm1, %v3836_v62, %v3044_v52  ;;  %v1242_v7 = vsel %vm252_vm1, %v3832_v59, %v3043_v53 }
 0x2aa   :  { %v3047_v39 = vpop.permute.xlu0 %3046 }
 0x2ab   :  { %v3049_v57 = vunpack.i.h.bf16 %v3047_v39  ;;  %v3048_v58 = vunpack.i.l.bf16 %v3047_v39 }
 0x2ad   :  { %v1241_v9 = vsel %vm252_vm1, %v3838_v63, %v3049_v57  ;;  %v1240_v10 = vsel %vm252_vm1, %v3834_v60, %v3048_v58  ;;  %vm1273_vm1 = vcmask 523264  }
 0x2ae   :  { %v3052_v54 = vpop.permute.xlu1 %3051 }
 0x2af   :  { %v3054_v1 = vunpack.i.h.bf16 %v3052_v54  ;;  %v3053_v2 = vunpack.i.l.bf16 %v3052_v54 }
 0x2b1   :  { %v1248_v19 = vsel %vm1244_vm4, %v1243_v6, %v3054_v1  ;;  %v1247_v21 = vsel %vm1244_vm4, %v1242_v7, %v3053_v2 }
 0x2b2   :  { %v3057_v20 = vpop.permute.xlu1 %3056 }
 0x2b3   :  { %v3059_v3 = vunpack.i.h.bf16 %v3057_v20  ;;  %v3058_v4 = vunpack.i.l.bf16 %v3057_v20 }
 0x2b5   :  { %v1246_v59 = vsel %vm1244_vm4, %v1241_v9, %v3059_v3  ;;  %v1245_v24 = vsel %vm1244_vm4, %v1240_v10, %v3058_v4 }
 0x2b6   :  { %v3062_v41 = vpop.permute.xlu1 %3061 }
 0x2b7   :  { %v3067_v42 = vpop.permute.xlu0 %3066  ;;  %v3064_v14 = vunpack.i.h.bf16 %v3062_v41  ;;  %v3063_v17 = vunpack.i.l.bf16 %v3062_v41 }
 0x2b8   :  { %v3069_v62 = vunpack.i.h.bf16 %v3067_v42  ;;  %v3068_v23 = vunpack.i.l.bf16 %v3067_v42 }
 0x2b9   :  { %v1253_v13 = vsel %vm1249_vm5, %v1248_v19, %v3064_v14  ;;  %v1252_v16 = vsel %vm1249_vm5, %v1247_v21, %v3063_v17 }
 0x2ba   :  { %v1251_v15 = vsel %vm1249_vm5, %v1246_v59, %v3069_v62  ;;  %v1250_v32 = vsel %vm1249_vm5, %v1245_v24, %v3068_v23 }
 0x2be   :  { %v3072_v43 = vpop.permute.xlu1 %3071 }
 0x2bf   :  { %v3880_v44 = vpop.permute.xlu0 %3076  ;;  %v3074_v26 = vunpack.i.h.bf16 %v3072_v43  ;;  %v3073_v27 = vunpack.i.l.bf16 %v3072_v43 }
 0x2c0   :  { %v3079_v63 = vunpack.i.h.bf16 %v3880_v44  ;;  %v3078_v60 = vunpack.i.l.bf16 %v3880_v44 }
 0x2c1   :  { %v1258_v28 = vsel %vm1254_vm6, %v1253_v13, %v3074_v26  ;;  %v1257_v40 = vsel %vm1254_vm6, %v1252_v16, %v3073_v27 }
 0x2c2   :  { %v1256_v36 = vsel %vm1254_vm6, %v1251_v15, %v3079_v63  ;;  %v1255_v56 = vsel %vm1254_vm6, %v1250_v32, %v3078_v60 }
 0x2c6   :  { %v3882_v45 = vpop.permute.xlu1 %3081 }
 0x2c7   :  { %v3884_v46 = vpop.permute.xlu0 %3086  ;;  %v3084_v31 = vunpack.i.h.bf16 %v3882_v45  ;;  %v3083_v33 = vunpack.i.l.bf16 %v3882_v45 }
 0x2c8   :  { %v3089_v12 = vunpack.i.h.bf16 %v3884_v46  ;;  %v3088_v18 = vunpack.i.l.bf16 %v3884_v46 }
 0x2c9   :  { %v1263_v0 = vsel %vm1259_vm7, %v1258_v28, %v3084_v31  ;;  %v1262_v38 = vsel %vm1259_vm7, %v1257_v40, %v3083_v33 }
 0x2ca   :  { %v1261_v61 = vsel %vm1259_vm7, %v1256_v36, %v3089_v12  ;;  %v1260_v20 = vsel %vm1259_vm7, %v1255_v56, %v3088_v18 }
 0x2ce   :  { %v3886_v47 = vpop.permute.xlu1 %3091 }
 0x2cf   :  { %v3888_v48 = vpop.permute.xlu0 %3096  ;;  %v3094_v25 = vunpack.i.h.bf16 %v3886_v47  ;;  %v3093_v22 = vunpack.i.l.bf16 %v3886_v47 }
 0x2d0   :  { %v3099_v35 = vunpack.i.h.bf16 %v3888_v48  ;;  %v3098_v30 = vunpack.i.l.bf16 %v3888_v48 }
 0x2d1   :  { %v1267_v42 = vsel %vm130_vm0, %v1263_v0, %v3094_v25  ;;  %v1266_v43 = vsel %vm130_vm0, %v1262_v38, %v3093_v22 }
 0x2d2   :  { %v1265_v46 = vsel %vm130_vm0, %v1261_v61, %v3099_v35  ;;  %v1264_v47 = vsel %vm130_vm0, %v1260_v20, %v3098_v30 }
 0x2d6   :  { %v3890_v49 = vpop.permute.xlu1 %3101 }
 0x2d7   :  { %v3892_v50 = vpop.permute.xlu0 %3106  ;;  %v3104_v39 = vunpack.i.h.bf16 %v3890_v49  ;;  %v3103_v41 = vunpack.i.l.bf16 %v3890_v49 }
 0x2d8   :  { %v3109_v44 = vunpack.i.h.bf16 %v3892_v50  ;;  %v3108_v45 = vunpack.i.l.bf16 %v3892_v50 }
 0x2d9   :  { %v1272_v2 = vsel %vm1268_vm8, %v1267_v42, %v3104_v39  ;;  %v1271_v3 = vsel %vm1268_vm8, %v1266_v43, %v3103_v41 }
 0x2da   :  { %v1269_v7 = vsel %vm1268_vm8, %v1264_v47, %v3108_v45 }
 0x2de   :  { %v3894_v51 = vpop.permute.xlu1 %3111 }
 0x2df   :  { %v3896_v55 = vpop.permute.xlu0 %3116  ;;  %v3114_v48 = vunpack.i.h.bf16 %v3894_v51  ;;  %v3113_v52 = vunpack.i.l.bf16 %v3894_v51  ;;  %v1270_v51 = vsel %vm1268_vm8, %v1265_v46, %v3109_v44 }
 0x2e0   :  { %v3119_v49 = vunpack.i.h.bf16 %v3896_v55  ;;  %v3118_v57 = vunpack.i.l.bf16 %v3896_v55 }
 0x2e1   :  { %v1276_v10 = vsel %vm1273_vm1, %v1271_v3, %v3113_v52 }
 0x2e2   :  { %v1274_v21 = vsel %vm1273_vm1, %v1269_v7, %v3118_v57 }
 0x2e6   :  { %v3898_v5 = vpop.permute.xlu1 %3121 }
 0x2e7   :  { %v3904_v8 = vpop.permute.xlu0 %3126  ;;  %v3124_v58 = vunpack.i.h.bf16 %v3898_v5  ;;  %v3123_v1 = vunpack.i.l.bf16 %v3898_v5  ;;  %v1277_v5 = vsel %vm1273_vm1, %v1272_v2, %v3114_v48 }
 0x2e8   :  { %v3129_v4 = vunpack.i.h.bf16 %v3904_v8  ;;  %v3128_v6 = vunpack.i.l.bf16 %v3904_v8  ;;  %v1275_v8 = vsel %vm1273_vm1, %v1270_v51, %v3119_v49 }
 0x2e9   :  { %v1282_v62 = vsel %vm1278_vm9, %v1277_v5, %v3124_v58  ;;  %v1281_v23 = vsel %vm1278_vm9, %v1276_v10, %v3123_v1 }
 0x2ea   :  { %v1280_v24 = vsel %vm1278_vm9, %v1275_v8, %v3129_v4  ;;  %v1279_v26 = vsel %vm1278_vm9, %v1274_v21, %v3128_v6 }
 0x2ee   :  { %v3914_v29 = vpop.permute.xlu1 %3131 }
 0x2ef   :  { %v3920_v34 = vpop.permute.xlu0 %3136  ;;  %v3134_v55 = vunpack.i.h.bf16 %v3914_v29  ;;  %v3133_v9 = vunpack.i.l.bf16 %v3914_v29 }
 0x2f0   :  { %v3139_v14 = vunpack.i.h.bf16 %v3920_v34  ;;  %v3138_v17 = vunpack.i.l.bf16 %v3920_v34 }
 0x2f1   :  { %v1287_v63 = vsel %vm1283_vm10, %v1282_v62, %v3134_v55  ;;  %v1286_v60 = vsel %vm1283_vm10, %v1281_v23, %v3133_v9  ;;  %v3346_v9 = vld [vmem:[%s4324_s8] sm:$0xff]  }
 0x2f2   :  { %v1285_v34 = vsel %vm1283_vm10, %v1280_v24, %v3139_v14  ;;  %v1284_v13 = vsel %vm1283_vm10, %v1279_v26, %v3138_v17 }
 0x2f6   :  { %v3934_v37 = vpop.permute.xlu1 %3141 }
 0x2f7   :  { %v3940_v54 = vpop.permute.xlu0 %3146  ;;  %v3144_v27 = vunpack.i.h.bf16 %v3934_v37  ;;  %v3143_v29 = vunpack.i.l.bf16 %v3934_v37 }
 0x2f8   :  { %v3149_v31 = vunpack.i.h.bf16 %v3940_v54  ;;  %v3148_v33 = vunpack.i.l.bf16 %v3940_v54 }
 0x2f9   :  { %v1292_v40 = vsel %vm1288_vm11, %v1287_v63, %v3144_v27  ;;  %v1291_v35 = vsel %vm1288_vm11, %v1286_v60, %v3143_v29 }
 0x2fa   :  { %v1290_v36 = vsel %vm1288_vm11, %v1285_v34, %v3149_v31  ;;  %v1289_v56 = vsel %vm1288_vm11, %v1284_v13, %v3148_v33 }
 0x2fe   :  { %v3152_v53 = vpop.permute.xlu1 %3151 }
 0x2ff   :  { %v3157_v50 = vpop.permute.xlu0 %3156  ;;  %v3154_v16 = vunpack.i.h.bf16 %v3152_v53  ;;  %v3153_v12 = vunpack.i.l.bf16 %v3152_v53 }
 0x300   :  { %v3159_v15 = vunpack.i.h.bf16 %v3157_v50  ;;  %v3158_v32 = vunpack.i.l.bf16 %v3157_v50 }
 0x301   :  { %v1297_v54 = vsel %vm1293_vm12, %v1292_v40, %v3154_v16  ;;  %v1296_v61 = vsel %vm1293_vm12, %v1291_v35, %v3153_v12 }
 0x302   :  { %v1295_v41 = vsel %vm1293_vm12, %v1290_v36, %v3159_v15  ;;  %v1294_v42 = vsel %vm1293_vm12, %v1289_v56, %v3158_v32 }
 0x306   :  { %v3162_v19 = vpop.permute.xlu1 %3161 }
 0x307   :  { %v3167_v59 = vpop.permute.xlu0 %3166  ;;  %v3164_v25 = vunpack.i.h.bf16 %v3162_v19  ;;  %v3163_v22 = vunpack.i.l.bf16 %v3162_v19 }
 0x308   :  { %v3169_v30 = vunpack.i.h.bf16 %v3167_v59  ;;  %v3168_v37 = vunpack.i.l.bf16 %v3167_v59 }
 0x309   :  { %v1302_v43 = vsel %vm1298_vm13, %v1297_v54, %v3164_v25  ;;  %v1301_v44 = vsel %vm1298_vm13, %v1296_v61, %v3163_v22 }
 0x30a   :  { %v1300_v46 = vsel %vm1298_vm13, %v1295_v41, %v3169_v30  ;;  %v1299_v47 = vsel %vm1298_vm13, %v1294_v42, %v3168_v37  ;;  %v445_v41 = vld [vmem:[%s4322_s6] sm:$0x1] }
 0x30e   :  { %v3172_v18 = vpop.permute.xlu1 %3171 }
 0x30f   :  { %v3177_v28 = vpop.permute.xlu0 %3176  ;;  %v3174_v0 = vunpack.i.h.bf16 %v3172_v18  ;;  %v3173_v38 = vunpack.i.l.bf16 %v3172_v18 }
 0x310   :  { %v3179_v20 = vunpack.i.h.bf16 %v3177_v28  ;;  %v3178_v39 = vunpack.i.l.bf16 %v3177_v28 }
 0x311   :  { %v1307_v49 = vsel %vm1303_vm14, %v1302_v43, %v3174_v0  ;;  %v1306_v57 = vsel %vm1303_vm14, %v1301_v44, %v3173_v38  ;;  %v446_v44 = vld [vmem:[%s4323_s7] sm:$0x1] }
 0x312   :  { %v1305_v50 = vsel %vm1303_vm14, %v1300_v46, %v3179_v20  ;;  %v1304_v2 = vsel %vm1303_vm14, %v1299_v47, %v3178_v39 }
 0x316   :  { %v3187_v45 = vpop.permute.xlu1 %3186 }
 0x317   :  { %v3189_v48 = vunpack.i.h.bf16 %v3187_v45  ;;  %v3188_v52 = vunpack.i.l.bf16 %v3187_v45  ;;  %v3182_v53 = vpop.permute.xlu0 %3181 }
 0x318   :  { %v3184_v58 = vunpack.i.h.bf16 %v3182_v53  ;;  %v3183_v1 = vunpack.i.l.bf16 %v3182_v53 }
 0x319   :  { %v1312_v3 = vsel %vm1308_vm15, %v1307_v49, %v3189_v48  ;;  %v1311_v4 = vsel %vm1308_vm15, %v1306_v57, %v3188_v52 }
 0x31a   :  { %v1314_v6 = vpack.c.bf16 %v1312_v3, %v1311_v4  ;;  %v1309_v51 = vsel %vm1308_vm15, %v1304_v2, %v3183_v1  ;;  %v1310_v7 = vsel %vm1308_vm15, %v1305_v50, %v3184_v58 }
 0x31b   :  { %v1313_v55 = vpack.c.bf16 %v1310_v7, %v1309_v51 }
 0x31d   :  { %2958 = vmatprep.mubr.bf16.mxu0 %v1313_v55 }
 0x31e   :  { %2959 = vmatmul.mubr.bf16.vlgmr.msra.gmra.mrb[16].mxu0 %v1314_v6 }
 0x31f   :  { %2966 = vmatprep.mubr.msk.bf16.mxu0 %vm1254_vm6, %v3346_v9 }
 0x3f1   :  { %v2960_v5 = vpop.f32.mrb[16].mxu0 }
 0x3f2   :  { %v1413_v10 = vpop.f32.mrb[17].mxu0  ;;  %v1443_v8 = vmul.f32 %v2960_v5, %v2960_v5  ;;  %v1431_v24 = vsel %vm1244_vm4, %v2960_v5, 0.0 }
 0x3f3   :  { %v1441_v14 = vmul.f32 %v1413_v10, %v1413_v10  ;;  %v2961_v17 = vpop.f32.mrb[18].mxu0  ;;  %v1428_v21 = vsel %vm1244_vm4, %v1413_v10, 0.0 }
 0x3f4   :  { %v1416_v19 = vpop.f32.mrb[19].mxu0  ;;  %v1444_v27 = vmul.f32 %v2961_v17, %v2961_v17  ;;  %v1448_v31 = vsel %vm1244_vm4, %v1443_v8, 0.0  ;;  %v1433_v33 = vsel %vm1244_vm4, %v2961_v17, 0.0  ;;  %v3444_v8 = vmov 0  }
 0x3f5   :  { %v1429_v62 = vsel %vm1244_vm4, %v1416_v19, 0.0  ;;  %v1442_v23 = vmul.f32 %v1416_v19, %v1416_v19  ;;  %v1445_v26 = vsel %vm1244_vm4, %v1441_v14, 0.0 }
 0x3f6   :  { %v1430_v59 = vadd.f32 %v1429_v62, %v1428_v21  ;;  %v1450_v16 = vsel %vm1244_vm4, %v1444_v27, 0.0  ;;  %v3349_v21 = vld [vmem:[%s4325_s9 + $0x8] sm:$0xff]   ;;  %v3351_v62 = vld [vmem:[%s4324_s8 + $0x18] sm:$0xff]   ;;  %v3356_v27 = vld [vmem:[%s4325_s9 + $0x20] sm:$0xff]  }
 0x3f7   :  { %v1446_v29 = vsel %vm1244_vm4, %v1442_v23, 0.0  ;;  %v3352_v23 = vld [vmem:[%s4325_s9 + $0x10] sm:$0xff]  }
 0x3f8   :  { %v1432_v63 = vadd.f32 %v1431_v24, %v1430_v59  ;;  %v1447_v60 = vadd.f32 %v1446_v29, %v1445_v26  ;;  %v3354_v59 = vld [vmem:[%s4324_s8 + $0x20] sm:$0xff]   ;;  %v3353_v24 = vld [vmem:[%s4325_s9 + $0x18] sm:$0xff]   ;;  %v3355_v26 = vld [vmem:[%s4324_s8 + $0x28] sm:$0xff]  }
 0x3f9   :  { %v3358_v29 = vld [vmem:[%s4324_s8 + $0x30] sm:$0xff]  }
 0x3fa   :  { %v1434_v34 = vadd.f32 %v1433_v33, %v1432_v63  ;;  %v1449_v13 = vadd.f32 %v1448_v31, %v1447_v60  ;;  %v3357_v63 = vld [vmem:[%s4325_s9 + $0x28] sm:$0xff]   ;;  %v3359_v60 = vld [vmem:[%s4324_s8 + $0x38] sm:$0xff]   ;;  %v3360_v31 = vld [vmem:[%s4325_s9 + $0x30] sm:$0xff]  }
 0x3fb   :  { %v3362_v33 = vld [vmem:[%s4324_s8 + $0x40] sm:$0xff]  }
 0x3fc   :  { %v1435_v12 = vrot.slane %v1434_v34, 4  ;;  %v1451_v18 = vadd.f32 %v1450_v16, %v1449_v13  ;;  %v3363_v13 = vld [vmem:[%s4324_s8 + $0x48] sm:$0xff]   ;;  %v3364_v16 = vld [vmem:[%s4325_s9 + $0x40] sm:$0xff]  }
 0x3fe   :  { %v1436_v15 = vadd.f32 %v1435_v12, %v1434_v34  ;;  %v1452_v32 = vrot.slane %v1451_v18, 4  ;;  %v3361_v34 = vld [vmem:[%s4325_s9 + $0x38] sm:$0xff]   ;;  %v3365_v12 = vld [vmem:[%s4324_s8 + $0x50] sm:$0xff]  }
 0x400   :  { %v1437_v25 = vrot.slane %v1436_v15, 2  ;;  %v1453_v22 = vadd.f32 %v1452_v32, %v1451_v18  ;;  %v3366_v18 = vld [vmem:[%s4324_s8 + $0x58] sm:$0xff]   ;;  %v3368_v32 = vld [vmem:[%s4324_s8 + $0x68] sm:$0xff]  }
 0x402   :  { %v1438_v28 = vadd.f32 %v1437_v25, %v1436_v15  ;;  %v1454_v40 = vrot.slane %v1453_v22, 2  ;;  %v3367_v15 = vld [vmem:[%s4324_s8 + $0x60] sm:$0xff]   ;;  %v3369_v25 = vld [vmem:[%s4324_s8 + $0x70] sm:$0xff]  }
 0x404   :  { %v1439_v35 = vrot.slane %v1438_v28, 1  ;;  %v1455_v30 = vadd.f32 %v1454_v40, %v1453_v22  ;;  %v3370_v22 = vld [vmem:[%s4324_s8 + $0x78] sm:$0xff]   ;;  %v3372_v40 = vld [vmem:[%s4324_s8 + $0x88] sm:$0xff]  }
 0x406   :  { %v1440_v37 = vadd.f32 %v1439_v35, %v1438_v28  ;;  %v1456_v36 = vrot.slane %v1455_v30, 1  ;;  %v3371_v28 = vld [vmem:[%s4324_s8 + $0x80] sm:$0xff]  }
 0x408   :  { %v1457_v56 = vadd.f32 %v1456_v36, %v1455_v30  ;;  %v1458_v0 = vmul.f32 0.03125, %v1440_v37 }
 0x40a   :  { %v1459_v38 = vmul.f32 0.03125, %v1457_v56  ;;  %v1460_v54 = vmul.f32 %v1458_v0, %v1458_v0 }
 0x40c   :  { %v1461_v61 = vsub.f32 %v1459_v38, %v1460_v54 }
 0x40e   :  { %v1462_v20 = vmax.f32 %v1461_v61, 0.0 }
 0x410   :  { %v1463_v39 = vadd.f32 1e-05, %v1462_v20 }
 0x412   :  { %3399 = vrsqrt.f32 %v1463_v39 }
 0x41c   :  { %v3400_v42 = vpop.eup %3399 }
 0x41d   :  { %v1465_v43 = vmul.f32 %v3400_v42, %v445_v41 }
 0x41f   :  { %v1466_v45 = vmul.f32 %v1465_v43, %v1458_v0  ;;  %v1472_v46 = vrot.slane %v1465_v43, %v3676_v11 }
 0x421   :  { %v1467_v47 = vsub.f32 %v446_v44, %v1466_v45  ;;  %v1475_v48 = vmul.f32 %v1472_v46, %v1416_v19  ;;  %v1474_v52 = vmul.f32 %v1472_v46, %v1413_v10  ;;  %v1476_v53 = vmul.f32 %v2960_v5, %v1472_v46  ;;  %v3350_v19 = vld [vmem:[%s4324_s8 + $0x10] sm:$0xff]  }
 0x422   :  { %v1477_v49 = vmul.f32 %v2961_v17, %v1472_v46  ;;  %v3348_v17 = vld [vmem:[%s4325_s9] sm:$0xff]  }
 0x423   :  { %v1482_v57 = vrot.slane %v1467_v47, %v3676_v11  ;;  %v3347_v11 = vld [vmem:[%s4324_s8 + $0x8] sm:$0xff]  }
 0x425   :  { %v1485_v58 = vadd.f32 %v1482_v57, %v1475_v48  ;;  %v1484_v1 = vadd.f32 %v1482_v57, %v1474_v52  ;;  %v1486_v50 = vadd.f32 %v1482_v57, %v1476_v53  ;;  %v1487_v2 = vadd.f32 %v1482_v57, %v1477_v49 }
 0x427   :  { %vm1489_vm2 = vcmp.ge.f32.partialorder %v1485_v58, 0.0  ;;  %v1493_v3 = vmul.f32 0.2, %v1485_v58  ;;  %vm1488_vm3 = vcmp.ge.f32.partialorder %v1484_v1, 0.0  ;;  %v1492_v4 = vmul.f32 0.2, %v1484_v1 }
 0x428   :  { %vm1490_vm5 = vcmp.ge.f32.partialorder %v1486_v50, 0.0  ;;  %vm1491_vm7 = vcmp.ge.f32.partialorder %v1487_v2, 0.0  ;;  %v1494_v6 = vmul.f32 0.2, %v1486_v50  ;;  %v1495_v51 = vmul.f32 0.2, %v1487_v2 }
 0x429   :  { %v1496_v7 = vsel %vm1488_vm3, %v1484_v1, %v1492_v4  ;;  %v1497_v55 = vsel %vm1489_vm2, %v1485_v58, %v1493_v3 }
 0x42a   :  { %v4024_v9 = vpack.c.bf16 %v1497_v55, %v1496_v7  ;;  %v1498_v5 = vsel %vm1490_vm5, %v1486_v50, %v1494_v6  ;;  %v1499_v10 = vsel %vm1491_vm7, %v1487_v2, %v1495_v51 }
 0x42b   :  { %v4026_v14 = vpack.c.bf16 %v1499_v10, %v1498_v5 }
 0x42c   :  { %2962 = vmatprep.subr.bf16.mxu0 %v4024_v9 }
 0x42d   :  { %2963 = vmatpush3.bf16.msra.mxu0 %v4024_v9 }
 0x42e   :  { %2964 = vmatprep.subr.bf16.mxu0 %v4026_v14 }
 0x431   :  { %2965 = vmatpush3.bf16.msra.mxu0 %v4026_v14 }
 0x432   :  { %2081 = vmatprep.subr.bf16.mxu0 %v3444_v8 }
 0x434   :  { %2967 = vmatmul.mubr.msk.bf16.vlgmr.msra.gmra.mrb[20].mxu0 %vm1254_vm6, %v3347_v11 }
 0x435   :  { %2082 = vmatpush1.bf16.msra.mxu0 %v3348_v17  ;;  %2970 = vmatprep.mubr.msk.bf16.mxu0 %vm1254_vm6, %v3350_v19 }
 0x436   :  { %2083 = vmatprep.subr.bf16.mxu0 %v3444_v8 }
 0x439   :  { %2084 = vmatpush1.bf16.msra.mxu0 %v3349_v21 }
 0x43a   :  { %2085 = vmatprep.subr.bf16.mxu0 %v3444_v8 }
 0x43c   :  { %2971 = vmatmul.mubr.msk.bf16.gmra.mrb[24].mxu0 %vm1254_vm6, %v3351_v62 }
 0x43d   :  { %2086 = vmatpush1.bf16.msra.mxu0 %v3352_v23  ;;  %2974 = vmatprep.mubr.msk.bf16.mxu0 %vm1254_vm6, %v3354_v59 }
 0x43e   :  { %2087 = vmatprep.subr.bf16.mxu0 %v3444_v8 }
 0x441   :  { %2088 = vmatpush1.bf16.msra.mxu0 %v3353_v24 }
 0x442   :  { %2089 = vmatprep.subr.bf16.mxu0 %v3444_v8 }
 0x444   :  { %2975 = vmatmul.mubr.msk.bf16.gmra.mrb[28].mxu0 %vm1254_vm6, %v3355_v26 }
 0x445   :  { %2090 = vmatpush1.bf16.msra.mxu0 %v3356_v27  ;;  %2978 = vmatprep.mubr.msk.bf16.mxu0 %vm1254_vm6, %v3358_v29 }
 0x446   :  { %2091 = vmatprep.subr.bf16.mxu0 %v3444_v8 }
 0x449   :  { %2092 = vmatpush1.bf16.msra.mxu0 %v3357_v63 }
 0x44a   :  { %2093 = vmatprep.subr.bf16.mxu0 %v3444_v8 }
 0x44c   :  { %2979 = vmatmul.mubr.msk.bf16.gmra.mrb[32].mxu0 %vm1254_vm6, %v3359_v60 }
 0x44d   :  { %2094 = vmatpush1.bf16.msra.mxu0 %v3360_v31  ;;  %2982 = vmatprep.mubr.msk.bf16.mxu0 %vm1254_vm6, %v3362_v33 }
 0x44e   :  { %2095 = vmatprep.subr.bf16.mxu0 %v3444_v8 }
 0x451   :  { %2096 = vmatpush1.bf16.msra.mxu0 %v3361_v34 }
 0x452   :  { %2097 = vmatprep.subr.bf16.mxu0 %v3444_v8 }
 0x454   :  { %2983 = vmatmul.mubr.msk.bf16.gmra.mrb[36].mxu0 %vm1254_vm6, %v3363_v13 }
 0x455   :  { %2098 = vmatpush1.bf16.msra.mxu0 %v3364_v16  ;;  %2986 = vmatprep.mubr.msk.bf16.mxu0 %vm1254_vm6, %v3365_v12 }
 0x456   :  { %3002 = vmatprep.subr.bf16.mxu0 %v4024_v9 }
 0x45c   :  { %2987 = vmatmul.mubr.msk.bf16.gmra.mrb[40].mxu0 %vm1254_vm6, %v3366_v18 }
 0x45d   :  { %2990 = vmatprep.mubr.msk.bf16.mxu0 %vm1254_vm6, %v3367_v15 }
 0x464   :  { %2991 = vmatmul.mubr.msk.bf16.gmra.mrb[44].mxu0 %vm1254_vm6, %v3368_v32 }
 0x465   :  { %2994 = vmatprep.mubr.msk.bf16.mxu0 %vm1254_vm6, %v3369_v25 }
 0x46c   :  { %2995 = vmatmul.mubr.msk.bf16.gmra.mrb[48].mxu0 %vm1254_vm6, %v3370_v22 }
 0x46d   :  { %2998 = vmatprep.mubr.msk.bf16.mxu0 %vm1254_vm6, %v3371_v28 }
 0x474   :  { %2999 = vmatmul.mubr.msk.bf16.gmra.mrb[52].mxu0 %vm1254_vm6, %v3372_v40 }
 0x507   :  { %v4128_v35 = vpop.f32.mrb[20].mxu0 }
 0x508   :  { %v4130_v30 = vpop.f32.mrb[21].mxu0 }
 0x509   :  { %v4132_v37 = vpop.f32.mrb[22].mxu0 }
 0x50a   :  { %v4134_v36 = vpop.f32.mrb[23].mxu0 }
 0x50f   :  { %v2972_v56 = vpop.f32.mrb[24].mxu0 }
 0x510   :  { %v1732_v0 = vpop.f32.mrb[25].mxu0 }
 0x511   :  { %v2973_v38 = vpop.f32.mrb[26].mxu0 }
 0x512   :  { %v3190_v54 = vpack.i.bf16 %v2973_v38, %v2972_v56  ;;  %v1735_v61 = vpop.f32.mrb[27].mxu0 }
 0x513   :  { %v3195_v20 = vpack.i.bf16 %v1735_v61, %v1732_v0 }
 0x514   :  { %3191 = vrot.lane.b32.xlu1 %v3190_v54, %s3430_s4 }
 0x515   :  { %3196 = vrot.lane.b32.xlu0 %v3195_v20, %s3430_s4 }
 0x517   :  { %v2976_v39 = vpop.f32.mrb[28].mxu0 }
 0x518   :  { %v1748_v41 = vpop.f32.mrb[29].mxu0 }
 0x519   :  { %v2977_v42 = vpop.f32.mrb[30].mxu0 }
 0x51a   :  { %v3200_v43 = vpack.i.bf16 %v2977_v42, %v2976_v39  ;;  %v1751_v44 = vpop.f32.mrb[31].mxu0 }
 0x51b   :  { %v3205_v45 = vpack.i.bf16 %v1751_v44, %v1748_v41 }
 0x51c   :  { %3201 = vrot.lane.b32.xlu0 %v3200_v43, %s3432_s25 }
 0x51d   :  { %3206 = vrot.lane.b32.xlu1 %v3205_v45, %s3432_s25 }
 0x51f   :  { %v2980_v46 = vpop.f32.mrb[32].mxu0 }
 0x520   :  { %v1764_v47 = vpop.f32.mrb[33].mxu0 }
 0x521   :  { %v2981_v48 = vpop.f32.mrb[34].mxu0 }
 0x522   :  { %v3230_v52 = vpack.i.bf16 %v2981_v48, %v2980_v46  ;;  %v1767_v53 = vpop.f32.mrb[35].mxu0 }
 0x523   :  { %v3210_v49 = vpack.i.bf16 %v1767_v53, %v1764_v47 }
 0x525   :  { %3211 = vrot.lane.b32.xlu0 %v3210_v49, %s3434_s1 }
 0x527   :  { %v2984_v57 = vpop.f32.mrb[36].mxu0 }
 0x528   :  { %v1780_v58 = vpop.f32.mrb[37].mxu0 }
 0x529   :  { %v2985_v1 = vpop.f32.mrb[38].mxu0 }
 0x52a   :  { %v3240_v50 = vpack.i.bf16 %v2985_v1, %v2984_v57  ;;  %v1783_v2 = vpop.f32.mrb[39].mxu0 }
 0x52b   :  { %v3215_v3 = vpack.i.bf16 %v1783_v2, %v1780_v58 }
 0x52d   :  { %3216 = vrot.lane.b32.xlu1 %v3215_v3, %s3436_s28 }
 0x52f   :  { %v2988_v4 = vpop.f32.mrb[40].mxu0 }
 0x530   :  { %v1796_v6 = vpop.f32.mrb[41].mxu0 }
 0x531   :  { %v2989_v51 = vpop.f32.mrb[42].mxu0 }
 0x532   :  { %v3245_v7 = vpack.i.bf16 %v2989_v51, %v2988_v4  ;;  %v1799_v55 = vpop.f32.mrb[43].mxu0 }
 0x533   :  { %v3220_v5 = vpack.i.bf16 %v1799_v55, %v1796_v6 }
 0x535   :  { %3221 = vrot.lane.b32.xlu0 %v3220_v5, %s3438_s16 }
 0x537   :  { %v2992_v10 = vpop.f32.mrb[44].mxu0 }
 0x538   :  { %v1812_v11 = vpop.f32.mrb[45].mxu0 }
 0x539   :  { %v2993_v17 = vpop.f32.mrb[46].mxu0 }
 0x53a   :  { %v3250_v19 = vpack.i.bf16 %v2993_v17, %v2992_v10  ;;  %v1815_v8 = vpop.f32.mrb[47].mxu0 }
 0x53b   :  { %v3225_v21 = vpack.i.bf16 %v1815_v8, %v1812_v11 }
 0x53d   :  { %3226 = vrot.lane.b32.xlu1 %v3225_v21, %s3440_s24 }
 0x53f   :  { %v2996_v62 = vpop.f32.mrb[48].mxu0 }
 0x540   :  { %v1828_v23 = vpop.f32.mrb[49].mxu0 }
 0x541   :  { %3231 = vrot.lane.b32.xlu1 %v3230_v52, %s3434_s1  ;;  %v2997_v59 = vpop.f32.mrb[50].mxu0 }
 0x542   :  { %v3255_v24 = vpack.i.bf16 %v2997_v59, %v2996_v62  ;;  %v1831_v26 = vpop.f32.mrb[51].mxu0 }
 0x543   :  { %v3235_v27 = vpack.i.bf16 %v1831_v26, %v1828_v23 }
 0x545   :  { %3246 = vrot.lane.b32.xlu1 %v3245_v7, %s3438_s16  ;;  %3236 = vrot.lane.b32.xlu0 %v3235_v27, %s3442_s19 }
 0x547   :  { %v4147_v29 = vpop.f32.mrb[52].mxu0 }
 0x548   :  { %v1844_v63 = vpop.f32.mrb[53].mxu0 }
 0x549   :  { %3256 = vrot.lane.b32.xlu1 %v3255_v24, %s3442_s19  ;;  %3241 = vrot.lane.b32.xlu0 %v3240_v50, %s3436_s28  ;;  %v4151_v60 = vpop.f32.mrb[54].mxu0 }
 0x54a   :  { %v2002_v31 = vpack.c.bf16 %v4151_v60, %v4147_v29  ;;  %v1847_v33 = vpop.f32.mrb[55].mxu0 }
 0x54b   :  { %v2000_v34 = vpack.c.bf16 %v1847_v33, %v1844_v63 }
 0x54d   :  { %3251 = vrot.lane.b32.xlu0 %v3250_v19, %s3440_s24  ;;  %2692 = vmatprep.mubr.msk.bf16.mxu0 %vm1244_vm4, %v2000_v34 }
 0x586   :  { %v3192_v13 = vpop.permute.xlu1 %3191 }
 0x587   :  { %v3197_v16 = vpop.permute.xlu0 %3196  ;;  %v3194_v52 = vunpack.i.h.bf16 %v3192_v13  ;;  %v3193_v53 = vunpack.i.l.bf16 %v3192_v13 }
 0x588   :  { %v3199_v22 = vunpack.i.h.bf16 %v3197_v16  ;;  %v3198_v28 = vunpack.i.l.bf16 %v3197_v16 }
 0x589   :  { %v1974_v19 = vsel %vm1244_vm4, %v4132_v37, %v3194_v52  ;;  %v1973_v8 = vsel %vm1244_vm4, %v4128_v35, %v3193_v53  ;;  %v3390_v52 = vld [vmem:[%s4327_s11 + $0x20] sm:$0xff]   ;;  %v3391_v53 = vld [vmem:[%s4327_s11 + $0x68] sm:$0xff]  }
 0x58a   :  { %v1972_v41 = vsel %vm1244_vm4, %v4134_v36, %v3199_v22  ;;  %v1971_v42 = vsel %vm1244_vm4, %v4130_v30, %v3198_v28 }
 0x58e   :  { %v3202_v18 = vpop.permute.xlu0 %3201 }
 0x58f   :  { %v3207_v12 = vpop.permute.xlu1 %3206  ;;  %v3204_v58 = vunpack.i.h.bf16 %v3202_v18  ;;  %v3203_v1 = vunpack.i.l.bf16 %v3202_v18 }
 0x590   :  { %v3209_v40 = vunpack.i.h.bf16 %v3207_v12  ;;  %v3208_v56 = vunpack.i.l.bf16 %v3207_v12 }
 0x591   :  { %v1978_v23 = vsel %vm1254_vm6, %v1974_v19, %v3204_v58  ;;  %v1977_v59 = vsel %vm1254_vm6, %v1973_v8, %v3203_v1  ;;  %v3394_v58 = vld [vmem:[%s4327_s11 + $0x30] sm:$0xff]  }
 0x592   :  { %v1976_v45 = vsel %vm1254_vm6, %v1972_v41, %v3209_v40  ;;  %v1975_v46 = vsel %vm1254_vm6, %v1971_v42, %v3208_v56  ;;  %v3374_v56 = vld [vmem:[%s4326_s10 + $0x8] sm:$0xff]   ;;  %v3382_v41 = vld [vmem:[%s4327_s11] sm:$0xff]  }
 0x593   :  { %v3383_v42 = vld [vmem:[%s4327_s11 + $0x48] sm:$0xff]  }
 0x597   :  { %v3212_v32 = vpop.permute.xlu0 %3211 }
 0x598   :  { %v3214_v38 = vunpack.i.h.bf16 %v3212_v32  ;;  %v3213_v54 = vunpack.i.l.bf16 %v3212_v32 }
 0x59a   :  { %v1980_v49 = vsel %vm130_vm0, %v1976_v45, %v3214_v38  ;;  %v1979_v57 = vsel %vm130_vm0, %v1975_v46, %v3213_v54  ;;  %v3377_v38 = vld [vmem:[%s4326_s10 + $0x20] sm:$0xff]   ;;  %v3378_v54 = vld [vmem:[%s4326_s10 + $0x28] sm:$0xff]   ;;  %v3386_v45 = vld [vmem:[%s4327_s11 + $0x10] sm:$0xff]  }
 0x59b   :  { %v3387_v46 = vld [vmem:[%s4327_s11 + $0x58] sm:$0xff]  }
 0x59f   :  { %v3217_v15 = vpop.permute.xlu1 %3216 }
 0x5a0   :  { %v3219_v61 = vunpack.i.h.bf16 %v3217_v15  ;;  %v3218_v20 = vunpack.i.l.bf16 %v3217_v15 }
 0x5a2   :  { %v1984_v36 = vsel %vm1273_vm1, %v1980_v49, %v3219_v61  ;;  %v1983_v30 = vsel %vm1273_vm1, %v1979_v57, %v3218_v20  ;;  %v3379_v61 = vld [vmem:[%s4326_s10 + $0x30] sm:$0xff]   ;;  %v3380_v20 = vld [vmem:[%s4326_s10 + $0x38] sm:$0xff]   ;;  %v3392_v49 = vld [vmem:[%s4327_s11 + $0x28] sm:$0xff]  }
 0x5a3   :  { %v3393_v57 = vld [vmem:[%s4327_s11 + $0x70] sm:$0xff]  }
 0x5a7   :  { %v3222_v0 = vpop.permute.xlu0 %3221 }
 0x5a8   :  { %v3224_v43 = vunpack.i.h.bf16 %v3222_v0  ;;  %v3223_v44 = vunpack.i.l.bf16 %v3222_v0  ;;  %v3376_v0 = vld [vmem:[%s4326_s10 + $0x18] sm:$0xff]  }
 0x5aa   :  { %v1988_v2 = vsel %vm1283_vm10, %v1984_v36, %v3224_v43  ;;  %v1987_v3 = vsel %vm1283_vm10, %v1983_v30, %v3223_v44  ;;  %v3384_v43 = vld [vmem:[%s4327_s11 + $0x8] sm:$0xff]   ;;  %v3385_v44 = vld [vmem:[%s4327_s11 + $0x50] sm:$0xff]  }
 0x5af   :  { %v3227_v25 = vpop.permute.xlu1 %3226 }
 0x5b0   :  { %v3229_v47 = vunpack.i.h.bf16 %v3227_v25  ;;  %v3228_v48 = vunpack.i.l.bf16 %v3227_v25 }
 0x5b2   :  { %v1992_v7 = vsel %vm1293_vm12, %v1988_v2, %v3229_v47  ;;  %v1991_v55 = vsel %vm1293_vm12, %v1987_v3, %v3228_v48  ;;  %v3388_v47 = vld [vmem:[%s4327_s11 + $0x18] sm:$0xff]   ;;  %v3389_v48 = vld [vmem:[%s4327_s11 + $0x60] sm:$0xff]  }
 0x5b3   :  { %v3232_v39 = vpop.permute.xlu1 %3231 }
 0x5b4   :  { %v3234_v5 = vunpack.i.h.bf16 %v3232_v39  ;;  %v3233_v10 = vunpack.i.l.bf16 %v3232_v39  ;;  %v3381_v39 = vld [vmem:[%s4327_s11 + $0x40] sm:$0xff]  }
 0x5b5   :  { %2818 = vmatprep.subr.bf16.mxu1 %v3381_v39 }
 0x5b6   :  { %v1982_v27 = vsel %vm130_vm0, %v1978_v23, %v3234_v5  ;;  %v1981_v63 = vsel %vm130_vm0, %v1977_v59, %v3233_v10  ;;  %2819 = vmatpush3.bf16.msra.mxu1 %v3382_v41 }
 0x5b7   :  { %v3237_v50 = vpop.permute.xlu0 %3236  ;;  %v3247_v4 = vpop.permute.xlu1 %3246  ;;  %2820 = vmatprep.subr.bf16.mxu1 %v3383_v42 }
 0x5b8   :  { %v3239_v6 = vunpack.i.h.bf16 %v3237_v50  ;;  %v3238_v51 = vunpack.i.l.bf16 %v3237_v50  ;;  %v3249_v35 = vunpack.i.h.bf16 %v3247_v4  ;;  %v3248_v13 = vunpack.i.l.bf16 %v3247_v4 }
 0x5ba   :  { %v1996_v11 = vsel %vm1303_vm14, %v1992_v7, %v3239_v6  ;;  %v1995_v17 = vsel %vm1303_vm14, %v1991_v55, %v3238_v51  ;;  %2821 = vmatpush3.bf16.msra.mxu1 %v3384_v43 }
 0x5bb   :  { %v1999_v21 = vpack.c.bf16 %v1996_v11, %v1995_v17  ;;  %v3242_v62 = vpop.permute.xlu0 %3241  ;;  %v3257_v33 = vpop.permute.xlu1 %3256  ;;  %2822 = vmatprep.subr.bf16.mxu1 %v3385_v44  ;;  %v3395_v11 = vld [vmem:[%s4327_s11 + $0x78] sm:$0xff]  }
 0x5bc   :  { %v3244_v24 = vunpack.i.h.bf16 %v3242_v62  ;;  %v3243_v26 = vunpack.i.l.bf16 %v3242_v62  ;;  %v3259_v15 = vunpack.i.h.bf16 %v3257_v33  ;;  %v3258_v32 = vunpack.i.l.bf16 %v3257_v33 }
 0x5bd   :  { %2114 = vmatmul.mubr.bf16.vlgmr.msra.gmra.mrb[56].mxu0 %v1999_v21  ;;  %v3396_v21 = vld [vmem:[%s4327_s11 + $0x38] sm:$0xff]  }
 0x5be   :  { %v1986_v34 = vsel %vm1273_vm1, %v1982_v27, %v3244_v24  ;;  %v1985_v37 = vsel %vm1273_vm1, %v1981_v63, %v3243_v26  ;;  %3003 = vmatpush3.bf16.msra.mxu0 %v4024_v9  ;;  %2693 = vmatprep.mubr.msk.bf16.mxu0 %vm1244_vm4, %v2002_v31  ;;  %v3373_v31 = vld [vmem:[%s4326_s10] sm:$0xff]  }
 0x5bf   :  { %3004 = vmatprep.subr.bf16.mxu0 %v4026_v14  ;;  %v3252_v16 = vpop.permute.xlu0 %3251  ;;  %v1989_v25 = vsel %vm1283_vm10, %v1985_v37, %v3248_v13  ;;  %v1990_v22 = vsel %vm1283_vm10, %v1986_v34, %v3249_v35  ;;  %2823 = vmatpush3.bf16.msra.mxu1 %v3386_v45 }
 0x5c0   :  { %v3254_v12 = vunpack.i.h.bf16 %v3252_v16  ;;  %v3253_v18 = vunpack.i.l.bf16 %v3252_v16  ;;  %2824 = vmatprep.subr.bf16.mxu1 %v3387_v46 }
 0x5c2   :  { %v1993_v9 = vsel %vm1293_vm12, %v1989_v25, %v3253_v18  ;;  %v1994_v28 = vsel %vm1293_vm12, %v1990_v22, %v3254_v12  ;;  %3005 = vmatpush3.bf16.msra.mxu0 %v4026_v14  ;;  %v3375_v14 = vld [vmem:[%s4326_s10 + $0x10] sm:$0xff]  }
 0x5c3   :  { %v1997_v29 = vsel %vm1303_vm14, %v1993_v9, %v3258_v32  ;;  %v1998_v60 = vsel %vm1303_vm14, %v1994_v28, %v3259_v15  ;;  %2825 = vmatpush3.bf16.msra.mxu1 %v3388_v47 }
 0x5c4   :  { %v2001_v40 = vpack.c.bf16 %v1998_v60, %v1997_v29  ;;  %2826 = vmatprep.subr.bf16.mxu1 %v3389_v48 }
 0x5c6   :  { %2122 = vmatmul.mubr.bf16.gmra.mrb[60].mxu0 %v2001_v40 }
 0x5c7   :  { %3006 = vmatprep.mubr.msk.bf16.mxu0 %vm1254_vm6, %v3373_v31  ;;  %2827 = vmatpush3.bf16.msra.mxu1 %v3390_v52 }
 0x5c8   :  { %2828 = vmatprep.subr.bf16.mxu1 %v3391_v53 }
 0x5cb   :  { %2829 = vmatpush3.bf16.msra.mxu1 %v3392_v49 }
 0x5cc   :  { %2830 = vmatprep.subr.bf16.mxu1 %v3393_v57 }
 0x5ce   :  { %3007 = vmatmul.mubr.msk.bf16.vlgmr.msra.gmra.mrb[64].mxu0 %vm1254_vm6, %v3374_v56 }
 0x5cf   :  { %3010 = vmatprep.mubr.msk.bf16.mxu0 %vm1254_vm6, %v3375_v14  ;;  %2831 = vmatpush3.bf16.msra.mxu1 %v3394_v58 }
 0x5d0   :  { %2832 = vmatprep.subr.bf16.mxu1 %v3395_v11 }
 0x5d3   :  { %2833 = vmatpush3.bf16.msra.mxu1 %v3396_v21 }
 0x5d6   :  { %3011 = vmatmul.mubr.msk.bf16.gmra.mrb[68].mxu0 %vm1254_vm6, %v3376_v0 }
 0x5d7   :  { %3014 = vmatprep.mubr.msk.bf16.mxu0 %vm1254_vm6, %v3377_v38 }
 0x5de   :  { %3015 = vmatmul.mubr.msk.bf16.gmra.mrb[72].mxu0 %vm1254_vm6, %v3378_v54 }
 0x5df   :  { %3018 = vmatprep.mubr.msk.bf16.mxu0 %vm1254_vm6, %v3379_v61 }
 0x5e6   :  { %3019 = vmatmul.mubr.msk.bf16.gmra.mrb[76].mxu0 %vm1254_vm6, %v3380_v20 }
 0x690   :  { %v2115_v1 = vpop.f32.mrb[56].mxu0 }
 0x691   :  { %2130 = vst [vmem:[#allocation2] sm:$0xff] %v2115_v1  ;;  %v2117_v36 = vpop.f32.mrb[57].mxu0 }
 0x692   :  { %v2118_v30 = vpop.f32.mrb[58].mxu0 }
 0x693   :  { %2131 = vst [vmem:[#allocation2 + $0x8] sm:$0xff] %v2118_v30  ;;  %v2120_v50 = vpop.f32.mrb[59].mxu0 }
 0x699   :  { %v2123_v2 = vpop.f32.mrb[60].mxu0 }
 0x69a   :  { %2132 = vst [vmem:[#allocation2 + $0x10] sm:$0xff] %v2123_v2  ;;  %v2125_v3 = vpop.f32.mrb[61].mxu0 }
 0x69b   :  { %v2126_v4 = vpop.f32.mrb[62].mxu0 }
 0x69c   :  { %2133 = vst [vmem:[#allocation2 + $0x18] sm:$0xff] %v2126_v4  ;;  %v2128_v6 = vpop.f32.mrb[63].mxu0 }
 0x6a1   :  { %v3008_v51 = vpop.f32.mrb[64].mxu0 }
 0x6a2   :  { %v2248_v7 = vpop.f32.mrb[65].mxu0 }
 0x6a3   :  { %v3009_v55 = vpop.f32.mrb[66].mxu0 }
 0x6a4   :  { %v2251_v5 = vpop.f32.mrb[67].mxu0 }
 0x6a9   :  { %v3012_v10 = vpop.f32.mrb[68].mxu0 }
 0x6aa   :  { %v2264_v17 = vpop.f32.mrb[69].mxu0 }
 0x6ab   :  { %v3013_v19 = vpop.f32.mrb[70].mxu0 }
 0x6ac   :  { %v2267_v8 = vpop.f32.mrb[71].mxu0 }
 0x6b1   :  { %v3016_v62 = vpop.f32.mrb[72].mxu0 }
 0x6b2   :  { %v3260_v23 = vpack.i.bf16 %v3008_v51, %v3016_v62  ;;  %v2280_v59 = vpop.f32.mrb[73].mxu0  ;;  %v2710_v51 = vld [vmem:[%s4328_s12] ss:$0 sm:$0xff] }
 0x6b3   :  { %v3017_v24 = vpop.f32.mrb[74].mxu0 }
 0x6b4   :  { %v3265_v26 = vpack.i.bf16 %v3009_v55, %v3017_v24  ;;  %3261 = vrot.lane.b32.xlu1 %v3260_v23, %s3432_s25  ;;  %v2283_v27 = vpop.f32.mrb[75].mxu0  ;;  %s3445_s25 = smov [#allocation2]  }
 0x6b5   :  { %v3270_v63 = vpack.i.bf16 %v2251_v5, %v2283_v27 }
 0x6b6   :  { %3266 = vrot.lane.b32.xlu0 %v3265_v26, %s3434_s1  ;;  %s2573_s1 = sshll.u32 %s3445_s25, 4  ;;  %s2574_s1 = int_to_ptr.vmem [resolvable:$true] %s2573_s1 }
 0x6b7   :  { %p3410_p1 = scmp.lt.s32.totalorder %s2574_s1, %s2574_s1 }
 0x6b9   :  { %v3020_v33 = vpop.f32.mrb[76].mxu0 }
 0x6ba   :  { %v3280_v34 = vpack.i.bf16 %v3012_v10, %v3020_v33  ;;  %3271 = vrot.lane.b32.xlu0 %v3270_v63, %s3430_s4  ;;  %v2296_v37 = vpop.f32.mrb[77].mxu0 }
 0x6bb   :  { %v3275_v35 = vpack.i.bf16 %v2264_v17, %v2296_v37  ;;  %v3021_v13 = vpop.f32.mrb[78].mxu0 }
 0x6bc   :  { %v3290_v16 = vpack.i.bf16 %v3013_v19, %v3021_v13  ;;  %v2299_v12 = vpop.f32.mrb[79].mxu0 }
 0x6bd   :  { %v3285_v18 = vpack.i.bf16 %v2267_v8, %v2299_v12  ;;  %3276 = vrot.lane.b32.xlu1 %v3275_v35, %s3436_s28  ;;  %s3405_s28 = scalar_lea.vmem %s2574_s1, 512 }
 0x6be   :  { %p3406_p0 = scmp.ne.s32.totalorder %s2574_s1, %s3405_s28  ;;  %p3411_p2 = scmp.lt.s32.totalorder %s3405_s28, %s3405_s28 }
 0x6bf   :  { %3286 = vrot.lane.b32.xlu0 %v3285_v18, %s3438_s16 }
 0x6c0   :  { %p3412_p3 = por %p3411_p2, %p3410_p1 }
 0x6c1   :  { %3281 = vrot.lane.b32.xlu1 %v3280_v34, %s3440_s24 }
 0x6c2   :  { %p3413_p4 = pnand %p3412_p3, %p3406_p0 }
 0x6c3   :  { %3291 = vrot.lane.b32.xlu0 %v3290_v16, %s3442_s19 }
 0x726   :  { %v3262_v32 = vpop.permute.xlu1 %3261 }
 0x727   :  { %v3264_v28 = vunpack.i.h.bf16 %v3262_v32  ;;  %v3263_v29 = vunpack.i.l.bf16 %v3262_v32 }
 0x728   :  { %v3267_v15 = vpop.permute.xlu0 %3266 }
 0x729   :  { %v3269_v60 = vunpack.i.h.bf16 %v3267_v15  ;;  %v3268_v31 = vunpack.i.l.bf16 %v3267_v15 }
 0x72c   :  { %v3272_v25 = vpop.permute.xlu0 %3271 }
 0x72d   :  { %v3274_v22 = vunpack.i.h.bf16 %v3272_v25  ;;  %v3273_v9 = vunpack.i.l.bf16 %v3272_v25 }
 0x72f   :  { %v2367_v40 = vsel %vm1244_vm4, %v2248_v7, %v3274_v22  ;;  %v2374_v56 = vsel %vm1244_vm4, %v2280_v59, %v3273_v9  ;;  %v3277_v14 = vpop.permute.xlu1 %3276 }
 0x730   :  { %v2368_v0 = vsel %vm1254_vm6, %v2367_v40, %v3264_v28  ;;  %v2375_v38 = vsel %vm1254_vm6, %v2374_v56, %v3263_v29  ;;  %v3279_v54 = vunpack.i.h.bf16 %v3277_v14  ;;  %v3278_v61 = vunpack.i.l.bf16 %v3277_v14 }
 0x731   :  { %v2369_v20 = vsel %vm130_vm0, %v2368_v0, %v3269_v60  ;;  %v2376_v39 = vsel %vm130_vm0, %v2375_v38, %v3268_v31  ;;  %v3287_v41 = vpop.permute.xlu0 %3286 }
 0x732   :  { %v2370_v42 = vsel %vm1273_vm1, %v2369_v20, %v3279_v54  ;;  %v2377_v43 = vsel %vm1273_vm1, %v2376_v39, %v3278_v61  ;;  %v3289_v44 = vunpack.i.h.bf16 %v3287_v41  ;;  %v3288_v45 = vunpack.i.l.bf16 %v3287_v41 }
 0x733   :  { %v3282_v46 = vpop.permute.xlu1 %3281 }
 0x734   :  { %v2371_v47 = vsel %vm1283_vm10, %v2370_v42, %v3289_v44  ;;  %v2378_v48 = vsel %vm1283_vm10, %v2377_v43, %v3288_v45  ;;  %v3284_v52 = vunpack.i.h.bf16 %v3282_v46  ;;  %v3283_v53 = vunpack.i.l.bf16 %v3282_v46 }
 0x735   :  { %v3292_v49 = vpop.permute.xlu0 %3291 }
 0x736   :  { %v2372_v57 = vsel %vm1293_vm12, %v2371_v47, %v3284_v52  ;;  %v2379_v58 = vsel %vm1293_vm12, %v2378_v48, %v3283_v53  ;;  %v3294_v1 = vunpack.i.h.bf16 %v3292_v49  ;;  %v3293_v36 = vunpack.i.l.bf16 %v3292_v49 }
 0x738   :  { %v2373_v30 = vsel %vm1303_vm14, %v2372_v57, %v3294_v1  ;;  %v2380_v50 = vsel %vm1303_vm14, %v2379_v58, %v3293_v36 }
 0x739   :  { %v2381_v2 = vpack.c.bf16 %v2373_v30, %v2373_v30  ;;  %v2382_v3 = vpack.c.bf16 %v2380_v50, %v2380_v50 }
 0x73b   :  { %2550 = vmatprep.mubr.bf16.mxu1 %v2382_v3 }
 0x73c   :  { %2551 = vmatmul.mubr.bf16.vlgmr.msra.gmra.mrb[64].mxu1 %v2381_v2 }
 0x80f   :  { %v2834_v4 = vpop.f32.mrb[64].mxu1 }
 0x810   :  { %v2835_v6 = vpop.f32.mrb[65].mxu1 }
 0x811   :  { %v2836_v7 = vadd.f32 %v2835_v6, %v2834_v4  ;;  %v2837_v55 = vpop.f32.mrb[66].mxu1 }
 0x812   :  { %v2838_v5 = vpop.f32.mrb[67].mxu1 }
 0x813   :  { %v2553_v10 = vadd.f32 %v2836_v7, %v2710_v51 }
 0x815   :  { %2558 = vmax.xlane.f32.xlu1 %v2553_v10 }
 0x8a2   :  { %v2559_v11 = vpop.xlane.xlu1 %2558 }
 0x8a3   :  { %v2560_v17 = vsub.f32 %v2553_v10, %v2559_v11 }
 0x8a5   :  { %v2561_v19 = vmul.f32 1.442695, %v2560_v17 }
 0x8a7   :  { %3401 = vpow2.f32 %v2561_v19 }
 0x8b1   :  { %v3402_v8 = vpop.eup %3401 }
 0x8b2   :  { %2563 = vadd.xlane.f32.xlu0 %v3402_v8 }
 0x8b3   :  { %3416 = shalt.err (!%p3413_p4)
}
 0x8b4   :  { %s3417_s24 = scalar_lea.hbm %s4329_s13, 512 }
 0x8b5   :  { %p3418_p5 = scmp.ne.s32.totalorder %s4329_s13, %s3417_s24  ;;  %p3421_p6 = scmp.lt.u32.totalorder %s3417_s24, %s4329_s13 }
 0x8b7   :  { %p3423_p7 = pnand %p3421_p6, %p3418_p5 }
 0x8b9   :  { %3426 = shalt.err (!%p3423_p7)
}
 0x8ba   :  { %s3446_s2 = smov 128  }
 0x8bb   :  { %2579 = dma.vmem_to_hbm [thread:$0]  %s2574_s1, 512, %s4329_s13, [#allocation3], %s3446_s2, %s3446_s2, %s3429_s23  }
 0x93f   :  { %v2564_v21 = vpop.xlane.xlu0 %2563 }
 0x940   :  { %3403 = vrcp.f32 %v2564_v21 }
 0x94a   :  { %v3404_v62 = vpop.eup %3403 }
 0x94b   :  { %v2566_v23 = vmul.f32 %v3404_v62, %v3402_v8 }
 0x94d   :  { %2567 = vst [vmem:[%s4330_s14] sm:$0xff] %v2566_v23 }
 0x94e   :  { %3427 = dma.done.wait [#allocation3], 512  }
 0x94f   :  { %3428 = vsyncadd [#allocation3], 4294966784 }
 0x950   :  { %2587 = vsyncpa [#allocation3], 1 }

</bundles_post_ra>
